<compile_context>
chip_gen: v5e
topology: v5e:2x2
jax: 0.10.0
libtpu: 0.0.40
codegen_flags: <defaults>
</compile_context>

<pallas_src>
import math

import jax
import jax.numpy as jnp
from jax.experimental import pallas as pl
from jax.experimental.pallas import tpu as pltpu

BN_EPS = 1e-5


# ----------------------------- kernels ----------------------------------------------


def _conv3x3_fused_t(x_ref, w1t_ref, b1_ref):
    """3x3 'same' conv on one padded NHWC tile as ONE fused, transposed MXU matmul.

    x_ref  : (1, H+2, W+2, C_in)   bf16
    w1t_ref: (C_mid, 9*C_in)       bf16   (columns ordered (ky*3+kx)*C_in + c_in)
    b1_ref : (C_mid, 1)            f32
    returns (C_mid, H*W) f32 — lane-dense (H*W on lanes).
    """
    Hp, Wp, C_in = x_ref.shape[1], x_ref.shape[2], x_ref.shape[3]
    H, W = Hp - 2, Wp - 2

    x = x_ref[0]                                     # (Hp, Wp, C_in): one tile load
    # In-VMEM im2col: 9 shifted patches concatenated along the contraction dim.
    taps = [x[ky:ky + H, kx:kx + W, :].reshape(H * W, C_in)
            for ky in range(3) for kx in range(3)]
    patches = jnp.concatenate(taps, axis=1)          # (H*W, 9*C_in) bf16

    # Single fused matmul, computed transposed ('mk,pk->mp', the q.k^T contraction
    # pattern) so the result is (C_mid, H*W) and all downstream work is lane-dense.
    h_t = jax.lax.dot_general(w1t_ref[...], patches,
                              dimension_numbers=(((1,), (1,)), ((), ())),
                              preferred_element_type=jnp.float32)
    return h_t + b1_ref[...]


def conv_bn_stats_kernel(x_ref, w1t_ref, b1_ref, h_ref, sum_ref, ssq_ref):
    """Pass 1: fused 3x3 conv; emit h (bf16) plus per-tile BN partial sums/ssq.

    Each grid step writes its own output blocks ('parallel' axis -> megacore on v7x);
    the tiny cross-tile reduction happens in plain JAX afterwards.
    """
    h_t = _conv3x3_fused_t(x_ref, w1t_ref, b1_ref)           # (C_mid, H*W) f32
    h_ref[0] = h_t.astype(h_ref.dtype)                        # bf16 h for pass 2
    sum_ref[0] = jnp.sum(h_t, axis=1, keepdims=True)          # (C_mid, 1)
    ssq_ref[0] = jnp.sum(h_t * h_t, axis=1, keepdims=True)    # (C_mid, 1)


def bn_apply_kernel(h_ref, mean_ref, inv_std_ref, w2t_ref, b2t_ref, o_ref):
    """Pass 2: BN normalize -> ReLU -> 1x1 conv -> sigmoid, all in (C, H*W) layout."""
    h = h_ref[0].astype(jnp.float32)                           # (C_mid, H*W)
    h = jnp.maximum((h - mean_ref[...]) * inv_std_ref[...], 0.0)
    # 1x1 conv: (C_out, C_mid) @ (C_mid, H*W) -> (C_out, H*W); bf16 operands, f32 acc.
    y_t = jnp.dot(w2t_ref[...], h.astype(jnp.bfloat16),
                  preferred_element_type=jnp.float32)
    y_t = y_t + b2t_ref[...]
    o_ref[0] = jax.nn.sigmoid(y_t).astype(o_ref.dtype)


# ----------------------------- wrapper -----------------------------------------------


def _vmem_limit_bytes():
    """Generation-aware VMEM limit (leave headroom for compiler-internal scratch)."""
    cap = 64 << 20                       # conservative default (v7x physical per-TC VMEM)
    try:
        info = pltpu.get_tpu_info()
        for attr in ("vmem_capacity_bytes", "vmem_size_bytes", "vmem_bytes"):
            v = getattr(info, attr, None)
            if v:
                cap = int(v)
                break
    except Exception:
        pass
    return int(max(32 << 20, min(cap - (16 << 20), 100 << 20)))


def outconv_forward(x_nchw, params):
    """x_nchw: (N, C_in, H, W) float32 -> (N, C_out, H, W) float32."""
    N, C_in, H, W = x_nchw.shape
    w1, b1, w2, b2 = params["w1"], params["b1"], params["w2"], params["b2"]
    C_mid = w1.shape[-1]
    C_out = w2.shape[-1]
    HW = H * W
    M = N * HW
    Hp, Wp = H + 2, W + 2

    # --- glue: NCHW -> padded NHWC bf16 activation stream; kernel-layout weights -------
    # TODO(synk): verify transpose+cast+pad fuse into one XLA pass over x (or move the
    #             halo padding in-kernel) to avoid an extra HBM round trip of x.
    x_nhwc = jnp.transpose(x_nchw, (0, 2, 3, 1)).astype(jnp.bfloat16)
    x_pad = jnp.pad(x_nhwc, ((0, 0), (1, 1), (1, 1), (0, 0)))          # (N, Hp, Wp, C_in)
    w1_t = jnp.transpose(w1.reshape(9 * C_in, C_mid)).astype(jnp.bfloat16)   # (C_mid, 9*C_in)
    b1_c = b1.reshape(C_mid, 1).astype(jnp.float32)
    w2_t = jnp.transpose(w2).astype(jnp.bfloat16)                            # (C_out, C_mid)
    b2_c = b2.reshape(C_out, 1).astype(jnp.float32)

    vmem_limit = _vmem_limit_bytes()

    x_spec = pl.BlockSpec((1, Hp, Wp, C_in), lambda n: (n, 0, 0, 0))
    h_spec = pl.BlockSpec((1, C_mid, HW), lambda n: (n, 0, 0))

    def resident(shape):
        zeros = (0,) * len(shape)
        return pl.BlockSpec(shape, lambda n: zeros)

    conv1_flops = 2 * M * 9 * C_in * C_mid
    x_bytes = N * Hp * Wp * C_in * 2
    h_bytes = N * C_mid * HW * 2

    # --- pass 1: fused conv1 + per-tile BN partial statistics ('parallel' grid) --------
    h, bn_sum, bn_ssq = pl.pallas_call(
        conv_bn_stats_kernel,
        grid=(N,),
        in_specs=[x_spec, resident((C_mid, 9 * C_in)), resident((C_mid, 1))],
        out_specs=(h_spec,
                   pl.BlockSpec((1, C_mid, 1), lambda n: (n, 0, 0)),
                   pl.BlockSpec((1, C_mid, 1), lambda n: (n, 0, 0))),
        out_shape=(jax.ShapeDtypeStruct((N, C_mid, HW), jnp.bfloat16),
                   jax.ShapeDtypeStruct((N, C_mid, 1), jnp.float32),
                   jax.ShapeDtypeStruct((N, C_mid, 1), jnp.float32)),
        compiler_params=pltpu.CompilerParams(
            dimension_semantics=("parallel",),
            vmem_limit_bytes=vmem_limit),
        cost_estimate=pl.CostEstimate(
            flops=int(conv1_flops + 4 * M * C_mid),
            transcendentals=0,
            bytes_accessed=int(x_bytes + h_bytes + 9 * C_in * C_mid * 2 + 12 * C_mid)),
    )(x_pad, w1_t, b1_c)

    # Finalize BN stats (tiny, plain JAX). Biased variance = PyTorch training-mode forward.
    mean = jnp.sum(bn_sum, axis=0) / M                                   # (C_mid, 1)
    var = jnp.maximum(jnp.sum(bn_ssq, axis=0) / M - mean * mean, 0.0)
    inv_std = jax.lax.rsqrt(var + BN_EPS)

    # --- pass 2: normalize + ReLU + 1x1 conv + sigmoid, lane-dense (C_out, H*W) output --
    y_t = pl.pallas_call(
        bn_apply_kernel,
        grid=(N,),
        in_specs=[h_spec,
                  resident((C_mid, 1)),       # mean
                  resident((C_mid, 1)),       # inv_std
                  resident((C_out, C_mid)),   # w2^T
                  resident((C_out, 1))],      # b2^T
        out_specs=pl.BlockSpec((1, C_out, HW), lambda n: (n, 0, 0)),
        out_shape=jax.ShapeDtypeStruct((N, C_out, HW), jnp.float32),
        compiler_params=pltpu.CompilerParams(
            dimension_semantics=("parallel",),
            vmem_limit_bytes=vmem_limit),
        cost_estimate=pl.CostEstimate(
            flops=int(2 * M * C_mid * C_out + 5 * M * C_mid + M * C_out),
            transcendentals=int(M * C_out),
            bytes_accessed=int(h_bytes + N * C_out * HW * 4 + C_out * C_mid * 2)),
    )(h, mean, inv_std, w2_t, b2_c)

    # --- glue: (N, C_out, H*W) is already channel-major -> just reshape to NCHW ---------
    return y_t.reshape(N, C_out, H, W)


# ----------------------------- params / reference ------------------------------------


def xavier_uniform(key, shape, fan_in, fan_out, dtype=jnp.float32):
    bound = math.sqrt(6.0 / (fan_in + fan_out))
    return jax.random.uniform(key, shape, dtype=dtype, minval=-bound, maxval=bound)


def init_outconv_params(key, in_channels, out_channels):
    mid = in_channels // 2
    k1, k2 = jax.random.split(key)
    # Conv1: 3x3, xavier_uniform (fan_in = C_in*9, fan_out = C_mid*9), bias = 0.
    w1 = xavier_uniform(k1, (3, 3, in_channels, mid), in_channels * 9, mid * 9)
    b1 = jnp.zeros((1, mid), jnp.float32)
    # Conv2: 1x1, xavier_uniform (fan_in = C_mid, fan_out = C_out), bias = 0.
    w2 = xavier_uniform(k2, (mid, out_channels), mid, out_channels)
    b2 = jnp.zeros((1, out_channels), jnp.float32)
    return {"w1": w1, "b1": b1, "w2": w2, "b2": b2}


def outconv_reference(x_nchw, params):
    """Pure-JAX f32 reference with the same semantics as the PyTorch module."""
    x_nhwc = jnp.transpose(x_nchw, (0, 2, 3, 1)).astype(jnp.float32)
    h = jax.lax.conv_general_dilated(
        x_nhwc, params["w1"], window_strides=(1, 1), padding=((1, 1), (1, 1)),
        dimension_numbers=("NHWC", "HWIO", "NHWC")) + params["b1"][0]
    mean = jnp.mean(h, axis=(0, 1, 2), keepdims=True)
    var = jnp.mean((h - mean) ** 2, axis=(0, 1, 2), keepdims=True)
    h = jnp.maximum((h - mean) * jax.lax.rsqrt(var + BN_EPS), 0.0)
    y = jnp.einsum("nhwc,cd->nhwd", h, params["w2"]) + params["b2"][0]
    y = jax.nn.sigmoid(y)
    return jnp.transpose(y, (0, 3, 1, 2))


if __name__ == "__main__":
    key = jax.random.PRNGKey(0)
    k_x, k_p = jax.random.split(key)

    N, C_in, H, W = 2, 8, 16, 16
    C_out = 2

    x = jax.random.normal(k_x, (N, C_in, H, W), dtype=jnp.float32)
    params = init_outconv_params(k_p, C_in, C_out)

    fwd = jax.jit(outconv_forward)
    out = jax.block_until_ready(fwd(x, params))

    ref = jax.block_until_ready(outconv_reference(x, params))
    assert out.shape == (N, C_out, H, W)
    # bf16 activation/weight/h stream vs f32 reference -> relaxed tolerance.
    assert jnp.allclose(out, ref, atol=3e-2, rtol=3e-2), "mismatch vs reference"

    print("KERNEL_OK")
</pallas_src>

<mosaic_0001>
module attributes {stable_mosaic.version = 11 : i64} {
  func.func @conv_bn_stats_kernel(%arg0: i32, %arg1: memref<1x18x18x8xbf16, #tpu.memory_space<vmem>>, %arg2: memref<4x72xbf16, #tpu.memory_space<vmem>>, %arg3: memref<4x1xf32, #tpu.memory_space<vmem>>, %arg4: memref<1x4x256xbf16, #tpu.memory_space<vmem>>, %arg5: memref<1x4x1xf32, #tpu.memory_space<vmem>>, %arg6: memref<1x4x1xf32, #tpu.memory_space<vmem>>) attributes {dimension_semantics = [#tpu.dimension_semantics<parallel>], iteration_bounds = array<i64: 2>, scalar_prefetch = 0 : i64, scratch_operands = 0 : i64, tpu.core_type = #tpu.core_type<tc>, window_params = [{transform_indices = @transform_0, window_bounds = array<i64: 1, 18, 18, 8>}, {pipeline_mode = #tpu.pipeline_mode<synchronous>, transform_indices = @transform_1, window_bounds = array<i64: 4, 72>}, {pipeline_mode = #tpu.pipeline_mode<synchronous>, transform_indices = @transform_2, window_bounds = array<i64: 4, 1>}, {transform_indices = @transform_3, window_bounds = array<i64: 1, 4, 256>}, {transform_indices = @transform_4, window_bounds = array<i64: 1, 4, 1>}, {transform_indices = @transform_5, window_bounds = array<i64: 1, 4, 1>}]} {
    %c0 = arith.constant 0 : index
    %c0_0 = arith.constant 0 : index
    %c0_1 = arith.constant 0 : index
    %c0_2 = arith.constant 0 : index
    %0 = vector.load %arg1[%c0, %c0_0, %c0_1, %c0_2] : memref<1x18x18x8xbf16, #tpu.memory_space<vmem>>, vector<1x18x18x8xbf16>
    %1 = vector.shape_cast %0 : vector<1x18x18x8xbf16> to vector<18x18x8xbf16>
    %2 = vector.extract_strided_slice %1 {offsets = [0, 0, 0], sizes = [16, 16, 8], strides = [1, 1, 1]} : vector<18x18x8xbf16> to vector<16x16x8xbf16>
    %3 = vector.shape_cast %2 : vector<16x16x8xbf16> to vector<256x8xbf16>
    %4 = vector.extract_strided_slice %1 {offsets = [0, 1, 0], sizes = [16, 16, 8], strides = [1, 1, 1]} : vector<18x18x8xbf16> to vector<16x16x8xbf16>
    %5 = vector.shape_cast %4 : vector<16x16x8xbf16> to vector<256x8xbf16>
    %6 = vector.extract_strided_slice %1 {offsets = [0, 2, 0], sizes = [16, 16, 8], strides = [1, 1, 1]} : vector<18x18x8xbf16> to vector<16x16x8xbf16>
    %7 = vector.shape_cast %6 : vector<16x16x8xbf16> to vector<256x8xbf16>
    %8 = vector.extract_strided_slice %1 {offsets = [1, 0, 0], sizes = [16, 16, 8], strides = [1, 1, 1]} : vector<18x18x8xbf16> to vector<16x16x8xbf16>
    %9 = vector.shape_cast %8 : vector<16x16x8xbf16> to vector<256x8xbf16>
    %10 = vector.extract_strided_slice %1 {offsets = [1, 1, 0], sizes = [16, 16, 8], strides = [1, 1, 1]} : vector<18x18x8xbf16> to vector<16x16x8xbf16>
    %11 = vector.shape_cast %10 : vector<16x16x8xbf16> to vector<256x8xbf16>
    %12 = vector.extract_strided_slice %1 {offsets = [1, 2, 0], sizes = [16, 16, 8], strides = [1, 1, 1]} : vector<18x18x8xbf16> to vector<16x16x8xbf16>
    %13 = vector.shape_cast %12 : vector<16x16x8xbf16> to vector<256x8xbf16>
    %14 = vector.extract_strided_slice %1 {offsets = [2, 0, 0], sizes = [16, 16, 8], strides = [1, 1, 1]} : vector<18x18x8xbf16> to vector<16x16x8xbf16>
    %15 = vector.shape_cast %14 : vector<16x16x8xbf16> to vector<256x8xbf16>
    %16 = vector.extract_strided_slice %1 {offsets = [2, 1, 0], sizes = [16, 16, 8], strides = [1, 1, 1]} : vector<18x18x8xbf16> to vector<16x16x8xbf16>
    %17 = vector.shape_cast %16 : vector<16x16x8xbf16> to vector<256x8xbf16>
    %18 = vector.extract_strided_slice %1 {offsets = [2, 2, 0], sizes = [16, 16, 8], strides = [1, 1, 1]} : vector<18x18x8xbf16> to vector<16x16x8xbf16>
    %19 = vector.shape_cast %18 : vector<16x16x8xbf16> to vector<256x8xbf16>
    %20 = tpu.concatenate %3, %5, %7, %9, %11, %13, %15, %17, %19 in 1 : vector<256x8xbf16>, vector<256x8xbf16>, vector<256x8xbf16>, vector<256x8xbf16>, vector<256x8xbf16>, vector<256x8xbf16>, vector<256x8xbf16>, vector<256x8xbf16>, vector<256x8xbf16> -> vector<256x72xbf16>
    %c0_3 = arith.constant 0 : index
    %c0_4 = arith.constant 0 : index
    %21 = vector.load %arg2[%c0_3, %c0_4] : memref<4x72xbf16, #tpu.memory_space<vmem>>, vector<4x72xbf16>
    %cst = arith.constant dense<0.000000e+00> : vector<4x256xf32>
    %22 = tpu.matmul %21, %20, %cst {dimension_numbers = #tpu.dot_dimension_numbers<[1], [1], [0], [0], [0, 0, 1, 0], [], []>} : vector<4x72xbf16>, vector<256x72xbf16>, vector<4x256xf32> -> vector<4x256xf32>
    %c0_5 = arith.constant 0 : index
    %c0_6 = arith.constant 0 : index
    %23 = vector.load %arg3[%c0_5, %c0_6] : memref<4x1xf32, #tpu.memory_space<vmem>>, vector<4x1xf32>
    %24 = vector.broadcast %23 : vector<4x1xf32> to vector<4x256xf32>
    %25 = arith.addf %22, %24 : vector<4x256xf32>
    %26 = arith.truncf %25 : vector<4x256xf32> to vector<4x256xbf16>
    %c0_7 = arith.constant 0 : index
    %c0_8 = arith.constant 0 : index
    %c0_9 = arith.constant 0 : index
    %27 = vector.load %arg4[%c0_7, %c0_8, %c0_9] : memref<1x4x256xbf16, #tpu.memory_space<vmem>>, vector<1x4x256xbf16>
    %28 = vector.shape_cast %27 : vector<1x4x256xbf16> to vector<4x256xbf16>
    %29 = vector.shape_cast %26 : vector<4x256xbf16> to vector<1x4x256xbf16>
    tpu.vector_store %arg4[%c0_7, %c0_8, %c0_9], %29 {strides = array<i32>} : memref<1x4x256xbf16, #tpu.memory_space<vmem>>, vector<1x4x256xbf16>,
    %cst_10 = arith.constant dense<0.000000e+00> : vector<4xf32>
    %30 = vector.multi_reduction <add>, %25, %cst_10 [1] : vector<4x256xf32> to vector<4xf32>
    %31 = vector.shape_cast %30 : vector<4xf32> to vector<4x1xf32>
    %c0_11 = arith.constant 0 : index
    %c0_12 = arith.constant 0 : index
    %c0_13 = arith.constant 0 : index
    %32 = vector.load %arg5[%c0_11, %c0_12, %c0_13] : memref<1x4x1xf32, #tpu.memory_space<vmem>>, vector<1x4x1xf32>
    %33 = vector.shape_cast %32 : vector<1x4x1xf32> to vector<4x1xf32>
    %34 = vector.shape_cast %31 : vector<4x1xf32> to vector<1x4x1xf32>
    tpu.vector_store %arg5[%c0_11, %c0_12, %c0_13], %34 {strides = array<i32>} : memref<1x4x1xf32, #tpu.memory_space<vmem>>, vector<1x4x1xf32>,
    %35 = arith.mulf %25, %25 : vector<4x256xf32>
    %cst_14 = arith.constant dense<0.000000e+00> : vector<4xf32>
    %36 = vector.multi_reduction <add>, %35, %cst_14 [1] : vector<4x256xf32> to vector<4xf32>
    %37 = vector.shape_cast %36 : vector<4xf32> to vector<4x1xf32>
    %c0_15 = arith.constant 0 : index
    %c0_16 = arith.constant 0 : index
    %c0_17 = arith.constant 0 : index
    %38 = vector.load %arg6[%c0_15, %c0_16, %c0_17] : memref<1x4x1xf32, #tpu.memory_space<vmem>>, vector<1x4x1xf32>
    %39 = vector.shape_cast %38 : vector<1x4x1xf32> to vector<4x1xf32>
    %40 = vector.shape_cast %37 : vector<4x1xf32> to vector<1x4x1xf32>
    tpu.vector_store %arg6[%c0_15, %c0_16, %c0_17], %40 {strides = array<i32>} : memref<1x4x1xf32, #tpu.memory_space<vmem>>, vector<1x4x1xf32>,
    return
  }
  func.func @transform_0(%arg0: i32) -> (i32, i32, i32, i32) {
    %c0_i32 = arith.constant 0 : i32
    %c0_i32_0 = arith.constant 0 : i32
    %c0_i32_1 = arith.constant 0 : i32
    %c0_i32_2 = arith.constant 0 : i32
    return %arg0, %c0_i32, %c0_i32_0, %c0_i32_1 : i32, i32, i32, i32
  }
  func.func @transform_1(%arg0: i32) -> (i32, i32) {
    %c0_i32 = arith.constant 0 : i32
    %c0_i32_0 = arith.constant 0 : i32
    %c0_i32_1 = arith.constant 0 : i32
    return %c0_i32, %c0_i32_0 : i32, i32
  }
  func.func @transform_2(%arg0: i32) -> (i32, i32) {
    %c0_i32 = arith.constant 0 : i32
    %c0_i32_0 = arith.constant 0 : i32
    %c0_i32_1 = arith.constant 0 : i32
    return %c0_i32, %c0_i32_0 : i32, i32
  }
  func.func @transform_3(%arg0: i32) -> (i32, i32, i32) {
    %c0_i32 = arith.constant 0 : i32
    %c0_i32_0 = arith.constant 0 : i32
    %c0_i32_1 = arith.constant 0 : i32
    return %arg0, %c0_i32, %c0_i32_0 : i32, i32, i32
  }
  func.func @transform_4(%arg0: i32) -> (i32, i32, i32) {
    %c0_i32 = arith.constant 0 : i32
    %c0_i32_0 = arith.constant 0 : i32
    %c0_i32_1 = arith.constant 0 : i32
    return %arg0, %c0_i32, %c0_i32_0 : i32, i32, i32
  }
  func.func @transform_5(%arg0: i32) -> (i32, i32, i32) {
    %c0_i32 = arith.constant 0 : i32
    %c0_i32_0 = arith.constant 0 : i32
    %c0_i32_1 = arith.constant 0 : i32
    return %arg0, %c0_i32, %c0_i32_0 : i32, i32, i32
  }
}

module attributes {stable_mosaic.version = 11 : i64} {
  func.func @bn_apply_kernel(%arg0: i32, %arg1: memref<1x4x256xbf16, #tpu.memory_space<vmem>>, %arg2: memref<4x1xf32, #tpu.memory_space<vmem>>, %arg3: memref<4x1xf32, #tpu.memory_space<vmem>>, %arg4: memref<2x4xbf16, #tpu.memory_space<vmem>>, %arg5: memref<2x1xf32, #tpu.memory_space<vmem>>, %arg6: memref<1x2x256xf32, #tpu.memory_space<vmem>>) attributes {dimension_semantics = [#tpu.dimension_semantics<parallel>], iteration_bounds = array<i64: 2>, scalar_prefetch = 0 : i64, scratch_operands = 0 : i64, tpu.core_type = #tpu.core_type<tc>, window_params = [{transform_indices = @transform_0, window_bounds = array<i64: 1, 4, 256>}, {pipeline_mode = #tpu.pipeline_mode<synchronous>, transform_indices = @transform_1, window_bounds = array<i64: 4, 1>}, {pipeline_mode = #tpu.pipeline_mode<synchronous>, transform_indices = @transform_2, window_bounds = array<i64: 4, 1>}, {pipeline_mode = #tpu.pipeline_mode<synchronous>, transform_indices = @transform_3, window_bounds = array<i64: 2, 4>}, {pipeline_mode = #tpu.pipeline_mode<synchronous>, transform_indices = @transform_4, window_bounds = array<i64: 2, 1>}, {transform_indices = @transform_5, window_bounds = array<i64: 1, 2, 256>}]} {
    %c0 = arith.constant 0 : index
    %c0_0 = arith.constant 0 : index
    %c0_1 = arith.constant 0 : index
    %0 = vector.load %arg1[%c0, %c0_0, %c0_1] : memref<1x4x256xbf16, #tpu.memory_space<vmem>>, vector<1x4x256xbf16>
    %1 = vector.shape_cast %0 : vector<1x4x256xbf16> to vector<4x256xbf16>
    %2 = arith.extf %1 : vector<4x256xbf16> to vector<4x256xf32>
    %c0_2 = arith.constant 0 : index
    %c0_3 = arith.constant 0 : index
    %3 = vector.load %arg2[%c0_2, %c0_3] : memref<4x1xf32, #tpu.memory_space<vmem>>, vector<4x1xf32>
    %4 = vector.broadcast %3 : vector<4x1xf32> to vector<4x256xf32>
    %5 = arith.subf %2, %4 : vector<4x256xf32>
    %c0_4 = arith.constant 0 : index
    %c0_5 = arith.constant 0 : index
    %6 = vector.load %arg3[%c0_4, %c0_5] : memref<4x1xf32, #tpu.memory_space<vmem>>, vector<4x1xf32>
    %7 = vector.broadcast %6 : vector<4x1xf32> to vector<4x256xf32>
    %8 = arith.mulf %5, %7 : vector<4x256xf32>
    %cst = arith.constant 0.000000e+00 : f32
    %9 = vector.broadcast %cst : f32 to vector<4x256xf32>
    %10 = arith.maximumf %8, %9 : vector<4x256xf32>
    %c0_6 = arith.constant 0 : index
    %c0_7 = arith.constant 0 : index
    %11 = vector.load %arg4[%c0_6, %c0_7] : memref<2x4xbf16, #tpu.memory_space<vmem>>, vector<2x4xbf16>
    %12 = arith.truncf %10 : vector<4x256xf32> to vector<4x256xbf16>
    %cst_8 = arith.constant dense<0.000000e+00> : vector<2x256xf32>
    %13 = tpu.matmul %11, %12, %cst_8 {dimension_numbers = #tpu.dot_dimension_numbers<[1], [0], [0], [1], [0, 0, 1, 1], [], []>} : vector<2x4xbf16>, vector<4x256xbf16>, vector<2x256xf32> -> vector<2x256xf32>
    %c0_9 = arith.constant 0 : index
    %c0_10 = arith.constant 0 : index
    %14 = vector.load %arg5[%c0_9, %c0_10] : memref<2x1xf32, #tpu.memory_space<vmem>>, vector<2x1xf32>
    %15 = vector.broadcast %14 : vector<2x1xf32> to vector<2x256xf32>
    %16 = arith.addf %13, %15 : vector<2x256xf32>
    %17 = arith.negf %16 : vector<2x256xf32>
    %18 = math.exp %17 : vector<2x256xf32>
    %cst_11 = arith.constant 1.000000e+00 : f32
    %19 = vector.broadcast %cst_11 : f32 to vector<2x256xf32>
    %20 = arith.addf %19, %18 : vector<2x256xf32>
    %21 = arith.divf %19, %20 : vector<2x256xf32>
    %c0_12 = arith.constant 0 : index
    %c0_13 = arith.constant 0 : index
    %c0_14 = arith.constant 0 : index
    %22 = vector.load %arg6[%c0_12, %c0_13, %c0_14] : memref<1x2x256xf32, #tpu.memory_space<vmem>>, vector<1x2x256xf32>
    %23 = vector.shape_cast %22 : vector<1x2x256xf32> to vector<2x256xf32>
    %24 = vector.shape_cast %21 : vector<2x256xf32> to vector<1x2x256xf32>
    tpu.vector_store %arg6[%c0_12, %c0_13, %c0_14], %24 {strides = array<i32>} : memref<1x2x256xf32, #tpu.memory_space<vmem>>, vector<1x2x256xf32>,
    return
  }
  func.func @transform_0(%arg0: i32) -> (i32, i32, i32) {
    %c0_i32 = arith.constant 0 : i32
    %c0_i32_0 = arith.constant 0 : i32
    %c0_i32_1 = arith.constant 0 : i32
    return %arg0, %c0_i32, %c0_i32_0 : i32, i32, i32
  }
  func.func @transform_1(%arg0: i32) -> (i32, i32) {
    %c0_i32 = arith.constant 0 : i32
    %c0_i32_0 = arith.constant 0 : i32
    %c0_i32_1 = arith.constant 0 : i32
    return %c0_i32, %c0_i32_0 : i32, i32
  }
  func.func @transform_2(%arg0: i32) -> (i32, i32) {
    %c0_i32 = arith.constant 0 : i32
    %c0_i32_0 = arith.constant 0 : i32
    %c0_i32_1 = arith.constant 0 : i32
    return %c0_i32, %c0_i32_0 : i32, i32
  }
  func.func @transform_3(%arg0: i32) -> (i32, i32) {
    %c0_i32 = arith.constant 0 : i32
    %c0_i32_0 = arith.constant 0 : i32
    %c0_i32_1 = arith.constant 0 : i32
    return %c0_i32, %c0_i32_0 : i32, i32
  }
  func.func @transform_4(%arg0: i32) -> (i32, i32) {
    %c0_i32 = arith.constant 0 : i32
    %c0_i32_0 = arith.constant 0 : i32
    %c0_i32_1 = arith.constant 0 : i32
    return %c0_i32, %c0_i32_0 : i32, i32
  }
  func.func @transform_5(%arg0: i32) -> (i32, i32, i32) {
    %c0_i32 = arith.constant 0 : i32
    %c0_i32_0 = arith.constant 0 : i32
    %c0_i32_1 = arith.constant 0 : i32
    return %arg0, %c0_i32, %c0_i32_0 : i32, i32, i32
  }
}

</mosaic_0001>

<bundles_post_ra>
// kernel: outconv_forward.3
= control target key start
LH: loop header
LB: loop body
LE: loop exit
PB: predicated region body
PF: predicated region fallthrough
CT: control target
= control target key end

     0   :  { %s479_s18 = smov 0   ;;  %s518_s0 = inlined_call_operand.vmem [shape: bf16[2,4,256], index: 0, kind: input, shape index: {}]   ;;  %s519_s1 = inlined_call_operand.vmem [shape: f32[4,1], index: 1, kind: input, shape index: {}]   ;;  %s520_s2 = inlined_call_operand.vmem [shape: f32[4,1], index: 2, kind: input, shape index: {}]   ;;  %s521_s3 = inlined_call_operand.vmem [shape: bf16[2,4], index: 3, kind: input, shape index: {}]   ;;  %s522_s4 = inlined_call_operand.vmem [shape: f32[2,1], index: 4, kind: input, shape index: {}]   ;;  %s523_s5 = inlined_call_operand.vmem [shape: f32[2,2,256], index: 5, kind: output, shape index: {}]  }
   0x1 LB: > { %s402_s19 = sadd.s32 4294967295, %s445_s18   ;;  %p406_p0 = scmp.ge.s32.totalorder %s445_s18, 1  ;;  %s445_s18 = sphi %s479_s18, %s15_s18  }
   0x2   : > { %p187_p1 = scmp.lt.s32.totalorder %s445_s18, 3 }
   0x4   : > { %p188_p2 = pnand %p406_p0, %p187_p1 }
   0x5   : > { %p215_p3 = scmp.lt.s32.totalorder (!%p188_p2), %s402_s19, 1 }
   0x6   : > { %191 = sbr.rel (%p188_p2) target bundleno = 317 (0x13d), region = 40 }
   0xb   : > { %v228_v0 = vld [vmem:[%s519_s1] sm:$0xf]  ;;  %v447_v1 = vmov 0   ;;  %s525_s19 = smov (!%p215_p3, %s402_s19), 1  ;;  %v448_v3 = vmov 839922192  }
   0xc   : > { %429 = vset.pattern.permute.xlu0 %v447_v1  ;;  %430 = vset.pattern.permute.xlu1 %v447_v1  ;;  %v239_v2 = vld [vmem:[%s520_s2] sm:$0xf]  ;;  %s417_s24 = sshll.u32 %s525_s19, 2  ;;  %v234_v4 = vunpack.c.l.s4 %v448_v3  ;;  %vm270_vm0 = vcmask 1041408   ;;  %vm266_vm1 = vcmask 31744  }
   0xd   : > { %231 = vperm.xlu0 %429, %v228_v0   ;;  %v260_v5 = vld [vmem:[%s522_s4] sm:$0x3]  ;;  %s219_s29 = scalar_lea.vmem %s518_s0, %s417_s24  ;;  %s224_s9 = scalar_lea.vmem %s523_s5, %s417_s24 }
   0xe   : > { %263 = vperm.xlu1 %430, %v260_v5   ;;  %v235_v7 = vunpack.c.0.s8 %v234_v4  ;;  %v226_v8 = vld [vmem:[%s219_s29] sm:$0xf] }
   0xf   : > { %v227_v9 = vunpack.c.l.bf16 %v226_v8  ;;  %v251_v22 = vld [vmem:[%s521_s3] sm:$0x1] }
  0x15   : > { %242 = vperm.xlu0 %429, %v239_v2  }
  0x7f   : > { %v232_v6 = vpop.permute.xlu0 %231 }
  0x80   : > { %v236_v10 = vperm.slane %v232_v6, %v235_v7  ;;  %v264_v23 = vpop.permute.xlu1 %263 }
  0x82   : > { %v238_v12 = vsub.f32 %v227_v9, %v236_v10 }
  0x87   : > { %v243_v11 = vpop.permute.xlu0 %242 }
  0x88   : > { %v247_v13 = vperm.slane %v243_v11, %v235_v7 }
  0x8a   : > { %v249_v14 = vmul.f32 %v247_v13, %v238_v12 }
  0x8c   : > { %v250_v15 = vmax.f32 %v249_v14, 0.0 }
  0x8e   : > { %253 = vst [vmem:[#allocation1] ss:$2 sm:$0xff] %v250_v15 }
  0x95   : > { %v254_v16 = vld.sshfl [vmem:[#allocation1] sm:$0xff pattern:$0x75316420]  ;;  %v255_v17 = vld.sshfl [vmem:[#allocation1 + $0x8] sm:$0xff pattern:$0x75316420] }
  0x96   : > { %v258_v18 = vpack.c.bf16 %v254_v16, %v254_v16  ;;  %v259_v19 = vpack.c.bf16 %v255_v17, %v255_v17 }
  0x98   : > { %v272_v20 = vsel %vm270_vm0, %v258_v18, 0  ;;  %v275_v21 = vsel %vm270_vm0, %v259_v19, 0 }
  0x99   : > { %284 = vmatpush.bf16.msra.mxu0 %v272_v20  ;;  %297 = vmatpush.bf16.msra.mxu1 %v275_v21 }
  0x9c   : > { %411 = vmatmul.msk.bf16.vlgmr.msra.gmra.mxu0 %vm266_vm1, %v251_v22  ;;  %412 = vmatmul.msk.bf16.vlgmr.msra.gmra.mxu1 %vm266_vm1, %v251_v22 }
 0x119   : > { %v286_v24 = vpop.f32.mrf.mxu0  ;;  %v299_v25 = vpop.f32.mrf.mxu1 }
 0x11a   : > { %v287_v26 = vadd.f32 %v286_v24, %v264_v23  ;;  %v300_v27 = vadd.f32 %v299_v25, %v264_v23 }
 0x11c   : > { %v413_v28 = vmul.f32 -1.442695, %v287_v26  ;;  %v414_v29 = vmul.f32 -1.442695, %v300_v27 }
 0x11e   : > { %431 = vpow2.f32 %v413_v28 }
 0x11f   : > { %433 = vpow2.f32 %v414_v29 }
 0x121   : > { %v288_v30 = vpop.f32.mrf.mxu0  ;;  %v301_v31 = vpop.f32.mrf.mxu1 }
 0x124   : > { %v432_v32 = vpop.eup %431 }
 0x125   : > { %v434_v33 = vpop.eup %433  ;;  %v309_v34 = vadd.f32 1.0, %v432_v32 }
 0x126   : > { %v310_v35 = vadd.f32 1.0, %v434_v33 }
 0x127   : > { %435 = vrcp.f32 %v309_v34  ;;  %vm316_vm4 = vweird.f32 %v309_v34  ;;  %v322_v47 = vand.u32 2147483648, %v309_v34  ;;  %v320_v48 = vand.u32 2147483647, %v309_v34 }
 0x128   : > { %437 = vrcp.f32 %v310_v35  ;;  %v337_v43 = vand.u32 2147483648, %v310_v35  ;;  %v335_v45 = vand.u32 2147483647, %v310_v35  ;;  %vm331_vm6 = vweird.f32 %v310_v35 }
 0x129   : > { %v323_v53 = vor.u32 1.1754944e-38, %v322_v47  ;;  %vm321_vm9 = vcmp.eq.f32.partialorder %v320_v48, 8.507059e+37 }
 0x12a   : > { %v338_v50 = vor.u32 1.1754944e-38, %v337_v43  ;;  %vm336_vm8 = vcmp.eq.f32.partialorder %v335_v45, 8.507059e+37 }
 0x12d   : > { %v436_v36 = vpop.eup %435 }
 0x12e   : > { %v438_v37 = vpop.eup %437  ;;  %v312_v38 = vmul.f32 %v436_v36, %v309_v34  ;;  %vm317_vm2 = vweird.f32 %v436_v36 }
 0x12f   : > { %v327_v39 = vmul.f32 %v438_v37, %v310_v35  ;;  %vm332_vm3 = vweird.f32 %v438_v37  ;;  %vm318_vm5 = vmor %vm316_vm4, %vm317_vm2 }
 0x130   : > { %v313_v40 = vsub.f32 1.0, %v312_v38  ;;  %vm333_vm7 = vmor %vm331_vm6, %vm332_vm3 }
 0x131   : > { %v328_v41 = vsub.f32 1.0, %v327_v39 }
 0x132   : > { %v314_v42 = vmul.f32 %v436_v36, %v313_v40 }
 0x133   : > { %v329_v44 = vmul.f32 %v438_v37, %v328_v41 }
 0x134   : > { %v315_v46 = vadd.f32 %v436_v36, %v314_v42 }
 0x135   : > { %v330_v49 = vadd.f32 %v438_v37, %v329_v44 }
 0x136   : > { %v319_v51 = vsel %vm318_vm5, %v436_v36, %v315_v46 }
 0x137   : > { %v334_v52 = vsel %vm333_vm7, %v438_v37, %v330_v49  ;;  %v324_v56 = vsel %vm321_vm9, %v323_v53, %v319_v51 }
 0x138   : > { %v339_v54 = vsel %vm336_vm8, %v338_v50, %v334_v52 }
 0x139   : > { %v343_v55 = vrot.slane %v339_v54, 6 }
 0x13b   : > { %v344_v57 = vsel %vm270_vm0, %v324_v56, %v343_v55 }
 0x13c   : > { %346 = vst [vmem:[%s224_s9] sm:$0xf] %v344_v57 }
 0x13d PF: > { %s15_s18 = sadd.s32 1, %s445_s18  }
 0x13e   : > { %p12_p4 = scmp.ge.s32.totalorder %s15_s18, 4  }
 0x140   :  { %14 = sbr.rel (!%p12_p4) target bundleno = 1 (0x1), region = 70 }

// kernel: outconv_forward.2
= control target key start
LH: loop header
LB: loop body
LE: loop exit
PB: predicated region body
PF: predicated region fallthrough
CT: control target
= control target key end

     0   :  { %s2017_s18 = smov 0   ;;  %s3114_s0 = inlined_call_operand.vmem [shape: bf16[2,18,18,8], index: 0, kind: input, shape index: {}]   ;;  %s3115_s1 = inlined_call_operand.vmem [shape: bf16[4,72], index: 1, kind: input, shape index: {}]   ;;  %s3116_s2 = inlined_call_operand.vmem [shape: f32[4,1], index: 2, kind: input, shape index: {}]   ;;  %s3117_s3 = inlined_call_operand.vmem [shape: bf16[2,4,256], index: 3, kind: output, shape index: {0}]   ;;  %s3118_s4 = inlined_call_operand.vmem [shape: f32[2,4,1], index: 4, kind: output, shape index: {1}]   ;;  %s3119_s5 = inlined_call_operand.vmem [shape: f32[2,4,1], index: 5, kind: output, shape index: {2}]  }
   0x1 LB: > { %s1827_s19 = sadd.s32 4294967295, %s1976_s18   ;;  %p1831_p0 = scmp.ge.s32.totalorder %s1976_s18, 1  ;;  %s1976_s18 = sphi %s2017_s18, %s16_s18  }
   0x2   : > { %p192_p1 = scmp.lt.s32.totalorder %s1976_s18, 3 }
   0x4   : > { %p193_p2 = pnand %p1831_p0, %p192_p1 }
   0x6   : > { %196 = sbr.rel (%p193_p2) target bundleno = 777 (0x309), region = 32 }
   0xb   : > { %p228_p3 = scmp.lt.s32.totalorder %s1827_s19, 1  ;;  %vm300_vm0 = vsmask.f32 3328  ;;  %vm301_vm1 = vsmask.f32 7440  ;;  %s1978_s24 = smov 8  }
   0xc   : > { %vm2069_vm2 = vmor %vm300_vm0, %vm301_vm1  ;;  %vm735_vm3 = vcmask 1042432   ;;  %vm736_vm4 = vcmask 1046532   ;;  %s1979_s25 = smov 16   ;;  %s1980_s26 = smov 24   ;;  %vm1336_vm6 = vcmask 64512   ;;  %vm1385_vm7 = vcmask 130048  }
   0xd   : > { %s3180_s19 = smov (!%p228_p3, %s1827_s19), 1  ;;  %vm2356_vm5 = vmor %vm735_vm3, %vm736_vm4  ;;  %s1981_s27 = smov 32   ;;  %vm1418_vm8 = vcmask 195584   ;;  %vm1451_vm9 = vcmask 261120   ;;  %vm1484_vm10 = vcmask 326656   ;;  %vm1550_vm11 = vcmask 457728  }
   0xe   : > { %s1950_s20 = smul.u32 216, %s3180_s19  ;;  %s1982_s28 = smov 48   ;;  %vm1517_vm12 = vcmask 392192   ;;  %vm1583_vm13 = vcmask 523264   ;;  %vm1623_vm14 = vcmask 588800   ;;  %vm1694_vm15 = vcmask 1043456  }
   0xf   : > { %s1983_s29 = smov 40   ;;  %s1984_s30 = smov 56   ;;  %vm1688_vm0 = vcmask 1041408   ;;  %vm1700_vm1 = vcmask 3072  }
  0x10   : > { %s2031_s23 = scalar_lea.vmem %s3114_s0, %s1950_s20  ;;  %s1985_s6 = smov 64  }
  0x11   : > { %v2034_v0 = vld [vmem:[%s2031_s23 + $0x30] sm:$0xf]  ;;  %v2037_v1 = vld [vmem:[%s2031_s23 + $0x34] sm:$0xf]  ;;  %v2040_v2 = vld [vmem:[%s2031_s23 + $0x38] sm:$0x1] }
  0x12   : > { %v400_v3 = vshrl.u32 %v2034_v0, 16  ;;  %v403_v4 = vshll.u32 %v2034_v0, 16  ;;  %v409_v5 = vshll.u32 %v2037_v1, 16  ;;  %v413_v6 = vshrl.u32 %v2037_v1, 16  ;;  %v2047_v7 = vld [vmem:[%s2031_s23 + $0x18] sm:$0xf] }
  0x13   : > { %v419_v8 = vshll.u32 %v2040_v2, 16  ;;  %v2051_v9 = vld [vmem:[%s2031_s23 + $0x1c] sm:$0xf]  ;;  %v2054_v10 = vld [vmem:[%s2031_s23 + $0x20] sm:$0x1]  ;;  %v352_v11 = vshrl.u32 %v2047_v7, 16 }
  0x14   : > { %v402_v12 = vrot.slane %v400_v3, 4  ;;  %v405_v13 = vrot.slane %v403_v4, 5  ;;  %v411_v14 = vrot.slane %v409_v5, 5  ;;  %v415_v15 = vrot.slane %v413_v6, 4  ;;  %v2058_v16 = vld [vmem:[%s2031_s23] sm:$0xf] }
  0x15   : > { %v421_v17 = vrot.slane %v419_v8, 5  ;;  %v354_v18 = vrot.slane %v352_v11, 4  ;;  %v355_v19 = vshll.u32 %v2047_v7, 16  ;;  %v361_v20 = vshll.u32 %v2051_v9, 16  ;;  %v2065_v25 = vld [vmem:[%s2031_s23 + $0x4] sm:$0xf] }
  0x16   : > { %v406_v21 = vor.u32 %v405_v13, %v402_v12  ;;  %v416_v22 = vor.u32 %v415_v15, %v411_v14  ;;  %v365_v23 = vshrl.u32 %v2051_v9, 16  ;;  %v371_v24 = vshll.u32 %v2054_v10, 16  ;;  %v2076_v36 = vld [vmem:[%s2031_s23 + $0x8] sm:$0x1]  ;;  %v2085_v44 = vld [vmem:[%s2031_s23 + $0x3c] sm:$0xf] }
  0x17   : > { %v357_v27 = vrot.slane %v355_v19, 5  ;;  %v363_v28 = vrot.slane %v361_v20, 5  ;;  %v304_v29 = vshrl.u32 %v2058_v16, 16  ;;  %v307_v30 = vshll.u32 %v2058_v16, 16  ;;  %v2093_v56 = vld [vmem:[%s2031_s23 + $0x40] sm:$0xf] }
  0x18   : > { %v407_v31 = vrot.slane %v406_v21, 4  ;;  %v417_v32 = vrot.slane %v416_v22, 4  ;;  %v367_v33 = vrot.slane %v365_v23, 4  ;;  %v373_v34 = vrot.slane %v371_v24, 5  ;;  %v2099_v62 = vld [vmem:[%s2031_s23 + $0x44] sm:$0x1] }
  0x19   : > { %v358_v35 = vor.u32 %v357_v27, %v354_v18  ;;  %v306_v37 = vrot.slane %v304_v29, 4  ;;  %v309_v38 = vrot.slane %v307_v30, 5  ;;  %v313_v39 = vshll.u32 %v2065_v25, 16  ;;  %v2102_v63 = vld [vmem:[%s2031_s23 + $0x24] sm:$0xf]  ;;  %s1931_s11 = sshll.u32 %s3180_s19, 2 }
  0x1a   : > { %v412_v40 = vsel %vm2069_vm2, %v407_v31, %v411_v14  ;;  %v422_v41 = vsel %vm2069_vm2, %v417_v32, %v421_v17  ;;  %v368_v42 = vor.u32 %v367_v33, %v363_v28  ;;  %v317_v43 = vshrl.u32 %v2065_v25, 16  ;;  %v2112_v14 = vld [vmem:[%s2031_s23 + $0x28] sm:$0xf]  ;;  %v2118_v19 = vld [vmem:[%s2031_s23 + $0x2c] sm:$0x1]  ;;  %s237_s14 = scalar_lea.vmem %s3117_s3, %s1931_s11  ;;  %s241_s17 = scalar_lea.vmem %s3118_s4, %s1931_s11 }
  0x1b   : > { %v974_v45 = vunpack.c.l.b16 %v412_v40  ;;  %v975_v46 = vunpack.c.l.b16 %v422_v41  ;;  %v359_v47 = vrot.slane %v358_v35, 4  ;;  %v310_v48 = vor.u32 %v309_v38, %v306_v37  ;;  %v2125_v27 = vld [vmem:[%s2031_s23 + $0xc] sm:$0xf]  ;;  %v2133_v40 = vld [vmem:[%s2031_s23 + $0x10] sm:$0xf]  ;;  %s245_s21 = scalar_lea.vmem %s3119_s5, %s1931_s11 }
  0x1c   : > { %v369_v49 = vrot.slane %v368_v42, 4  ;;  %v315_v50 = vrot.slane %v313_v39, 5  ;;  %v319_v51 = vrot.slane %v317_v43, 4  ;;  %v323_v52 = vshll.u32 %v2076_v36, 16 }
  0x1d   : > { %v2088_v53 = vpack.c.b16 %v975_v46, %v974_v45  ;;  %v364_v54 = vsel %vm2069_vm2, %v359_v47, %v363_v28  ;;  %v311_v55 = vrot.slane %v310_v48, 4  ;;  %v424_v57 = vshrl.u32 %v2085_v44, 16  ;;  %v2137_v47 = vld [vmem:[%s2031_s23 + $0x14] sm:$0x1] }
  0x1e   : > { %v374_v58 = vsel %vm2069_vm2, %v369_v49, %v373_v34  ;;  %v970_v59 = vunpack.c.l.b16 %v364_v54  ;;  %v320_v60 = vor.u32 %v319_v51, %v315_v50  ;;  %v325_v61 = vrot.slane %v323_v52, 5  ;;  %v2144_v52 = vld [vmem:[%s2031_s23 + $0x60] sm:$0xf] }
  0x1f   : > { %3147 = vst [vmem:[#allocation2_spill] sm:$0xff] %v2088_v53  ;;  %1022 = vrot.lane.b32.xlu2 %v2088_v53, %s1978_s24  ;;  %v971_v3 = vunpack.c.l.b16 %v374_v58  ;;  %v316_v4 = vsel %vm2069_vm2, %v311_v55, %v315_v50  ;;  %v426_v5 = vrot.slane %v424_v57, 4  ;;  %v427_v6 = vshll.u32 %v2085_v44, 16 }
  0x20   : > { %v321_v8 = vrot.slane %v320_v60, 4  ;;  %v966_v11 = vunpack.c.l.b16 %v316_v4  ;;  %v433_v12 = vshll.u32 %v2093_v56, 16  ;;  %v437_v13 = vshrl.u32 %v2093_v56, 16 }
  0x21   : > { %v2114_v15 = vpack.c.b16 %v971_v3, %v970_v59  ;;  %v429_v17 = vrot.slane %v427_v6, 5  ;;  %v443_v18 = vshll.u32 %v2099_v62, 16  ;;  %v376_v20 = vshrl.u32 %v2102_v63, 16 }
  0x22   : > { %v326_v21 = vsel %vm2069_vm2, %v321_v8, %v325_v61  ;;  %v435_v22 = vrot.slane %v433_v12, 5  ;;  %v439_v23 = vrot.slane %v437_v13, 4  ;;  %v379_v24 = vshll.u32 %v2102_v63, 16  ;;  %v2154_v8 = vld [vmem:[%s2031_s23 + $0x64] sm:$0xf] }
  0x23   : > { %3148 = vst [vmem:[#allocation3_spill] sm:$0xff] %v2114_v15  ;;  %1018 = vrot.lane.b32.xlu1 %v2114_v15, %s1978_s24  ;;  %v967_v28 = vunpack.c.l.b16 %v326_v21  ;;  %v430_v29 = vor.u32 %v429_v17, %v426_v5  ;;  %v445_v30 = vrot.slane %v443_v18, 5  ;;  %v378_v31 = vrot.slane %v376_v20, 4  ;;  %v2160_v20 = vld [vmem:[%s2031_s23 + $0x68] sm:$0x1] }
  0x24   : > { %v440_v32 = vor.u32 %v439_v23, %v435_v22  ;;  %v381_v33 = vrot.slane %v379_v24, 5  ;;  %v385_v34 = vshll.u32 %v2112_v14, 16  ;;  %v389_v35 = vshrl.u32 %v2112_v14, 16  ;;  %v2163_v21 = vld [vmem:[%s2031_s23 + $0x54] sm:$0xf] }
  0x25   : > { %v998_v37 = vpack.c.b16 %v967_v28, %v966_v11  ;;  %v431_v38 = vrot.slane %v430_v29, 4  ;;  %v395_v39 = vshll.u32 %v2118_v19, 16  ;;  %v328_v41 = vshrl.u32 %v2125_v27, 16  ;;  %v2270_v15 = vld [vmem:[%s2031_s23 + $0x74] sm:$0x1] }
  0x26   : > { %v441_v42 = vrot.slane %v440_v32, 4  ;;  %v382_v43 = vor.u32 %v381_v33, %v378_v31  ;;  %v387_v45 = vrot.slane %v385_v34, 5  ;;  %v391_v46 = vrot.slane %v389_v35, 4 }
  0x27   : > { %1014 = vrot.lane.b32.xlu0 %v998_v37, %s1978_s24  ;;  %v436_v48 = vsel %vm2069_vm2, %v431_v38, %v435_v22  ;;  %v397_v49 = vrot.slane %v395_v39, 5  ;;  %v330_v50 = vrot.slane %v328_v41, 4  ;;  %v331_v51 = vshll.u32 %v2125_v27, 16  ;;  %v2174_v37 = vld [vmem:[%s2031_s23 + $0x58] sm:$0xf] }
  0x28   : > { %v446_v54 = vsel %vm2069_vm2, %v441_v42, %v445_v30  ;;  %v976_v55 = vunpack.c.l.b16 %v436_v48  ;;  %v383_v57 = vrot.slane %v382_v43, 4  ;;  %v392_v58 = vor.u32 %v391_v46, %v387_v45 }
  0x29   : > { %v977_v59 = vunpack.c.l.b16 %v446_v54  ;;  %v333_v60 = vrot.slane %v331_v51, 5  ;;  %v337_v61 = vshll.u32 %v2133_v40, 16  ;;  %v341_v3 = vshrl.u32 %v2133_v40, 16 }
  0x2a   : > { %v388_v4 = vsel %vm2069_vm2, %v383_v57, %v387_v45  ;;  %v393_v5 = vrot.slane %v392_v58, 4  ;;  %v347_v6 = vshll.u32 %v2137_v47, 16  ;;  %v496_v11 = vshrl.u32 %v2144_v52, 16  ;;  %v2182_v45 = vld [vmem:[%s2031_s23 + $0x5c] sm:$0x1] }
  0x2b   : > { %v2157_v12 = vpack.c.b16 %v977_v59, %v976_v55  ;;  %v972_v13 = vunpack.c.l.b16 %v388_v4  ;;  %v334_v17 = vor.u32 %v333_v60, %v330_v50  ;;  %v339_v18 = vrot.slane %v337_v61, 5  ;;  %v2189_v58 = vld [vmem:[%s2031_s23 + $0x48] sm:$0xf] }
  0x2c   : > { %v398_v22 = vsel %vm2069_vm2, %v393_v5, %v397_v49  ;;  %v343_v23 = vrot.slane %v341_v3, 4  ;;  %v349_v24 = vrot.slane %v347_v6, 5  ;;  %v498_v28 = vrot.slane %v496_v11, 4 }
  0x2d   : > { %3149 = vst [vmem:[#allocation4_spill] sm:$0xff] %v2157_v12  ;;  %1024 = vrot.lane.b32.xlu2 %v2157_v12, %s1978_s24  ;;  %v973_v29 = vunpack.c.l.b16 %v398_v22  ;;  %v335_v30 = vrot.slane %v334_v17, 4  ;;  %v499_v31 = vshll.u32 %v2144_v52, 16  ;;  %v505_v32 = vshll.u32 %v2154_v8, 16  ;;  %v2196_v22 = vld [vmem:[%s2031_s23 + $0x4c] sm:$0xf] }
  0x2e   : > { %v344_v33 = vor.u32 %v343_v23, %v339_v18  ;;  %v509_v34 = vshrl.u32 %v2154_v8, 16  ;;  %v515_v35 = vshll.u32 %v2160_v20, 16  ;;  %v472_v38 = vshrl.u32 %v2163_v21, 16  ;;  %v2297_v12 = vld [vmem:[%s2031_s23 + $0x9c] sm:$0xf] }
  0x2f   : > { %v2177_v39 = vpack.c.b16 %v973_v29, %v972_v13  ;;  %v340_v41 = vsel %vm2069_vm2, %v335_v30, %v339_v18  ;;  %v501_v42 = vrot.slane %v499_v31, 5  ;;  %v507_v43 = vrot.slane %v505_v32, 5  ;;  %v2204_v30 = vld [vmem:[%s2031_s23 + $0x50] sm:$0x1]  ;;  %v2208_v32 = vld [vmem:[%s2031_s23 + $0x84] sm:$0xf] }
  0x30   : > { %v345_v46 = vrot.slane %v344_v33, 4  ;;  %v968_v48 = vunpack.c.l.b16 %v340_v41  ;;  %v511_v49 = vrot.slane %v509_v34, 4  ;;  %v517_v50 = vrot.slane %v515_v35, 5 }
  0x31   : > { %3150 = vst [vmem:[#allocation5_spill] sm:$0xff] %v2177_v39  ;;  %1020 = vrot.lane.b32.xlu1 %v2177_v39, %s1978_s24  ;;  %v502_v51 = vor.u32 %v501_v42, %v498_v28  ;;  %v474_v54 = vrot.slane %v472_v38, 4  ;;  %v475_v55 = vshll.u32 %v2163_v21, 16  ;;  %v481_v57 = vshll.u32 %v2174_v37, 16 }
  0x32   : > { %v350_v59 = vsel %vm2069_vm2, %v345_v46, %v349_v24  ;;  %v512_v60 = vor.u32 %v511_v49, %v507_v43  ;;  %v485_v61 = vshrl.u32 %v2174_v37, 16  ;;  %v491_v3 = vshll.u32 %v2182_v45, 16 }
  0x33   : > { %v969_v4 = vunpack.c.l.b16 %v350_v59  ;;  %v503_v5 = vrot.slane %v502_v51, 4  ;;  %v477_v6 = vrot.slane %v475_v55, 5  ;;  %v483_v11 = vrot.slane %v481_v57, 5 }
  0x34   : > { %v513_v13 = vrot.slane %v512_v60, 4  ;;  %v487_v17 = vrot.slane %v485_v61, 4  ;;  %v493_v18 = vrot.slane %v491_v3, 5  ;;  %v448_v23 = vshrl.u32 %v2189_v58, 16  ;;  %v2223_v60 = vld [vmem:[%s2031_s23 + $0x88] sm:$0xf] }
  0x35   : > { %v2199_v28 = vpack.c.b16 %v969_v4, %v968_v48  ;;  %v508_v24 = vsel %vm2069_vm2, %v503_v5, %v507_v43  ;;  %v478_v29 = vor.u32 %v477_v6, %v474_v54  ;;  %v451_v31 = vshll.u32 %v2189_v58, 16  ;;  %v2226_v61 = vld [vmem:[%s2031_s23 + $0x8c] sm:$0x1] }
  0x36   : > { %v518_v33 = vsel %vm2069_vm2, %v513_v13, %v517_v50  ;;  %v982_v34 = vunpack.c.l.b16 %v508_v24  ;;  %v488_v35 = vor.u32 %v487_v17, %v483_v11  ;;  %v450_v38 = vrot.slane %v448_v23, 4  ;;  %3153 = vst [vmem:[#allocation8_spill] sm:$0xff] %v2226_v61  ;;  %v2231_v13 = vld [vmem:[%s2031_s23 + $0x78] sm:$0xf] }
  0x37   : > { %3151 = vst [vmem:[#allocation6_spill] sm:$0xff] %v2199_v28  ;;  %1016 = vrot.lane.b32.xlu0 %v2199_v28, %s1978_s24  ;;  %v983_v41 = vunpack.c.l.b16 %v518_v33  ;;  %v479_v42 = vrot.slane %v478_v29, 4  ;;  %v453_v43 = vrot.slane %v451_v31, 5  ;;  %v457_v46 = vshll.u32 %v2196_v22, 16 }
  0x38   : > { %v489_v48 = vrot.slane %v488_v35, 4  ;;  %v461_v49 = vshrl.u32 %v2196_v22, 16  ;;  %v467_v51 = vshll.u32 %v2204_v30, 16  ;;  %v568_v50 = vshrl.u32 %v2208_v32, 16 }
  0x39   : > { %v2218_v54 = vpack.c.b16 %v983_v41, %v982_v34  ;;  %v484_v55 = vsel %vm2069_vm2, %v479_v42, %v483_v11  ;;  %v454_v57 = vor.u32 %v453_v43, %v450_v38  ;;  %v459_v59 = vrot.slane %v457_v46, 5  ;;  %v2244_v41 = vld [vmem:[%s2031_s23 + $0x7c] sm:$0xf] }
  0x3a   : > { %v494_v3 = vsel %vm2069_vm2, %v489_v48, %v493_v18  ;;  %v980_v4 = vunpack.c.l.b16 %v484_v55  ;;  %v463_v5 = vrot.slane %v461_v49, 4  ;;  %v469_v6 = vrot.slane %v467_v51, 5  ;;  %v2248_v51 = vld [vmem:[%s2031_s23 + $0x80] sm:$0x1] }
  0x3b   : > { %3152 = vst [vmem:[#allocation7_spill] sm:$0xff] %v2218_v54  ;;  %1030 = vrot.lane.b32.xlu2 %v2218_v54, %s1978_s24  ;;  %v981_v17 = vunpack.c.l.b16 %v494_v3  ;;  %v455_v11 = vrot.slane %v454_v57, 4  ;;  %v570_v23 = vrot.slane %v568_v50, 4  ;;  %v571_v24 = vshll.u32 %v2208_v32, 16  ;;  %v2254_v3 = vld [vmem:[%s2031_s23 + $0x6c] sm:$0xf] }
  0x3c   : > { %v464_v29 = vor.u32 %v463_v5, %v459_v59  ;;  %v577_v31 = vshll.u32 %v2223_v60, 16  ;;  %v581_v18 = vshrl.u32 %v2223_v60, 16  ;;  %v587_v33 = vshll.u32 %v2226_v61, 16  ;;  %v2316_v54 = vld [vmem:[%s2031_s23 + $0xa4] sm:$0x1] }
  0x3d   : > { %v2239_v34 = vpack.c.b16 %v981_v17, %v980_v4  ;;  %v460_v35 = vsel %vm2069_vm2, %v455_v11, %v459_v59  ;;  %v573_v38 = vrot.slane %v571_v24, 5  ;;  %v544_v42 = vshrl.u32 %v2231_v13, 16 }
  0x3e   : > { %v465_v43 = vrot.slane %v464_v29, 4  ;;  %v978_v46 = vunpack.c.l.b16 %v460_v35  ;;  %v579_v48 = vrot.slane %v577_v31, 5  ;;  %v583_v49 = vrot.slane %v581_v18, 4 }
  0x3f   : > { %3154 = vst [vmem:[#allocation9_spill] sm:$0xff] %v2239_v34  ;;  %1028 = vrot.lane.b32.xlu1 %v2239_v34, %s1978_s24  ;;  %v574_v50 = vor.u32 %v573_v38, %v570_v23  ;;  %v589_v55 = vrot.slane %v587_v33, 5  ;;  %v546_v57 = vrot.slane %v544_v42, 4  ;;  %v547_v59 = vshll.u32 %v2231_v13, 16  ;;  %v2262_v38 = vld [vmem:[%s2031_s23 + $0x70] sm:$0xf] }
  0x40   : > { %v470_v4 = vsel %vm2069_vm2, %v465_v43, %v469_v6  ;;  %v584_v5 = vor.u32 %v583_v49, %v579_v48  ;;  %v553_v17 = vshll.u32 %v2244_v41, 16  ;;  %v557_v11 = vshrl.u32 %v2244_v41, 16 }
  0x41   : > { %v979_v24 = vunpack.c.l.b16 %v470_v4  ;;  %v575_v29 = vrot.slane %v574_v50, 4  ;;  %v549_v23 = vrot.slane %v547_v59, 5  ;;  %v563_v31 = vshll.u32 %v2248_v51, 16  ;;  %v2273_v50 = vld [vmem:[%s2031_s23 + $0xa8] sm:$0xf] }
  0x42   : > { %v585_v18 = vrot.slane %v584_v5, 4  ;;  %v555_v33 = vrot.slane %v553_v17, 5  ;;  %v559_v35 = vrot.slane %v557_v11, 4  ;;  %v520_v42 = vshrl.u32 %v2254_v3, 16  ;;  %3156 = vst [vmem:[#allocation11_spill] sm:$0xff] %v2273_v50 }
  0x43   : > { %v2265_v6 = vpack.c.b16 %v979_v24, %v978_v46  ;;  %v580_v43 = vsel %vm2069_vm2, %v575_v29, %v579_v48  ;;  %v550_v49 = vor.u32 %v549_v23, %v546_v57  ;;  %v565_v28 = vrot.slane %v563_v31, 5 }
  0x44   : > { %v590_v59 = vsel %vm2069_vm2, %v585_v18, %v589_v55  ;;  %v988_v4 = vunpack.c.l.b16 %v580_v43  ;;  %v560_v5 = vor.u32 %v559_v35, %v555_v33  ;;  %v522_v17 = vrot.slane %v520_v42, 4  ;;  %v2289_v43 = vld [vmem:[%s2031_s23 + $0xac] sm:$0xf] }
  0x45   : > { %3155 = vst [vmem:[#allocation10_spill] sm:$0xff] %v2265_v6  ;;  %1026 = vrot.lane.b32.xlu0 %v2265_v6, %s1978_s24  ;;  %v989_v46 = vunpack.c.l.b16 %v590_v59  ;;  %v551_v11 = vrot.slane %v550_v49, 4  ;;  %v523_v48 = vshll.u32 %v2254_v3, 16  ;;  %v529_v57 = vshll.u32 %v2262_v38, 16  ;;  %v2292_v49 = vld [vmem:[%s2031_s23 + $0xb0] sm:$0x1] }
  0x46   : > { %v561_v24 = vrot.slane %v560_v5, 4  ;;  %v533_v29 = vshrl.u32 %v2262_v38, 16  ;;  %v539_v55 = vshll.u32 %v2270_v15, 16  ;;  %v640_v23 = vshrl.u32 %v2273_v50, 16  ;;  %3158 = vst [vmem:[#allocation13_spill] sm:$0xff] %v2289_v43 }
  0x47   : > { %v2284_v31 = vpack.c.b16 %v989_v46, %v988_v4  ;;  %v556_v18 = vsel %vm2069_vm2, %v551_v11, %v555_v33  ;;  %v525_v35 = vrot.slane %v523_v48, 5  ;;  %v531_v42 = vrot.slane %v529_v57, 5  ;;  %3159 = vst [vmem:[#allocation14_spill] sm:$0xff] %v2292_v49  ;;  %v2308_v6 = vld [vmem:[%s2031_s23 + $0xa0] sm:$0xf] }
  0x48   : > { %v566_v59 = vsel %vm2069_vm2, %v561_v24, %v565_v28  ;;  %v986_v5 = vunpack.c.l.b16 %v556_v18  ;;  %v535_v39 = vrot.slane %v533_v29, 4  ;;  %v541_v53 = vrot.slane %v539_v55, 5 }
  0x49   : > { %3157 = vst [vmem:[#allocation12_spill] sm:$0xff] %v2284_v31  ;;  %1036 = vrot.lane.b32.xlu2 %v2284_v31, %s1978_s24  ;;  %v987_v4 = vunpack.c.l.b16 %v566_v59  ;;  %v526_v33 = vor.u32 %v525_v35, %v522_v17  ;;  %v642_v46 = vrot.slane %v640_v23, 4  ;;  %v643_v11 = vshll.u32 %v2273_v50, 16 }
  0x4a   : > { %v536_v48 = vor.u32 %v535_v39, %v531_v42  ;;  %v649_v57 = vshll.u32 %v2289_v43, 16  ;;  %v653_v28 = vshrl.u32 %v2289_v43, 16  ;;  %v659_v24 = vshll.u32 %v2292_v49, 16 }
  0x4b   : > { %v2305_v29 = vpack.c.b16 %v987_v4, %v986_v5  ;;  %v527_v55 = vrot.slane %v526_v33, 4  ;;  %v645_v18 = vrot.slane %v643_v11, 5  ;;  %v616_v17 = vshrl.u32 %v2297_v12, 16  ;;  %v2320_v33 = vld [vmem:[%s2031_s23 + $0x90] sm:$0xf] }
  0x4c   : > { %v537_v23 = vrot.slane %v536_v48, 4  ;;  %v651_v35 = vrot.slane %v649_v57, 5  ;;  %v655_v59 = vrot.slane %v653_v28, 4  ;;  %v661_v39 = vrot.slane %v659_v24, 5 }
  0x4d   : > { %3160 = vst [vmem:[#allocation15_spill] sm:$0xff] %v2305_v29  ;;  %1034 = vrot.lane.b32.xlu1 %v2305_v29, %s1978_s24  ;;  %v532_v31 = vsel %vm2069_vm2, %v527_v55, %v531_v42  ;;  %v646_v34 = vor.u32 %v645_v18, %v642_v46  ;;  %v618_v5 = vrot.slane %v616_v17, 4  ;;  %v619_v4 = vshll.u32 %v2297_v12, 16 }
  0x4e   : > { %v542_v11 = vsel %vm2069_vm2, %v537_v23, %v541_v53  ;;  %v984_v48 = vunpack.c.l.b16 %v532_v31  ;;  %v656_v57 = vor.u32 %v655_v59, %v651_v35  ;;  %v625_v28 = vshll.u32 %v2308_v6, 16  ;;  %v2333_v59 = vld [vmem:[%s2031_s23 + $0x94] sm:$0xf] }
  0x4f   : > { %v985_v24 = vunpack.c.l.b16 %v542_v11  ;;  %v647_v29 = vrot.slane %v646_v34, 4  ;;  %v621_v42 = vrot.slane %v619_v4, 5  ;;  %v629_v46 = vshrl.u32 %v2308_v6, 16  ;;  %v2336_v11 = vld [vmem:[%s2031_s23 + $0x98] sm:$0x1] }
  0x50   : > { %v657_v55 = vrot.slane %v656_v57, 4  ;;  %v627_v18 = vrot.slane %v625_v28, 5  ;;  %v635_v17 = vshll.u32 %v2316_v54, 16  ;;  %v592_v49 = vshrl.u32 %v2320_v33, 16 }
  0x51   : > { %v2328_v43 = vpack.c.b16 %v985_v24, %v984_v48  ;;  %v652_v53 = vsel %vm2069_vm2, %v647_v29, %v651_v35  ;;  %v622_v31 = vor.u32 %v621_v42, %v618_v5  ;;  %v631_v23 = vrot.slane %v629_v46, 4 }
  0x52   : > { %v662_v34 = vsel %vm2069_vm2, %v657_v55, %v661_v39  ;;  %v994_v4 = vunpack.c.l.b16 %v652_v53  ;;  %v637_v57 = vrot.slane %v635_v17, 5  ;;  %v594_v28 = vrot.slane %v592_v49, 4 }
  0x53   : > { %3161 = vst [vmem:[#allocation16_spill] sm:$0xff] %v2328_v43  ;;  %1032 = vrot.lane.b32.xlu0 %v2328_v43, %s1978_s24  ;;  %v995_v48 = vunpack.c.l.b16 %v662_v34  ;;  %v623_v24 = vrot.slane %v622_v31, 4  ;;  %v632_v50 = vor.u32 %v631_v23, %v627_v18  ;;  %v595_v29 = vshll.u32 %v2320_v33, 16 }
  0x54   : > { %v601_v35 = vshll.u32 %v2333_v59, 16  ;;  %v605_v5 = vshrl.u32 %v2333_v59, 16  ;;  %v611_v42 = vshll.u32 %v2336_v11, 16 }
  0x55   : > { %v2346_v46 = vpack.c.b16 %v995_v48, %v994_v4  ;;  %v628_v49 = vsel %vm2069_vm2, %v623_v24, %v627_v18  ;;  %v633_v39 = vrot.slane %v632_v50, 4  ;;  %v597_v55 = vrot.slane %v595_v29, 5  ;;  %v1949_v50 = vld [vmem:[%s2031_s23 + $0xcc] sm:$0xff] }
  0x56   : > { %v992_v17 = vunpack.c.l.b16 %v628_v49  ;;  %v603_v53 = vrot.slane %v601_v35, 5  ;;  %v607_v31 = vrot.slane %v605_v5, 4  ;;  %v613_v23 = vrot.slane %v611_v42, 5 }
  0x57   : > { %1042 = vrot.lane.b32.xlu2 %v2346_v46, %s1978_s24  ;;  %v638_v34 = vsel %vm2069_vm2, %v633_v39, %v637_v57  ;;  %v598_v43 = vor.u32 %v597_v55, %v594_v28  ;;  %v1838_v4 = vrot.slane %v2125_v27, 9  ;;  %v747_v18 = vrot.slane %v2133_v40, 5  ;;  %v2370_v39 = vld [vmem:[%s2031_s23 + $0xb4] sm:$0xf] }
  0x58   : > { %v993_v48 = vunpack.c.l.b16 %v638_v34  ;;  %v608_v61 = vor.u32 %v607_v31, %v603_v53  ;;  %v750_v24 = vrot.slane %v2137_v47, 5  ;;  %v1837_v57 = vrot.slane %v2058_v16, 9  ;;  %v2386_v31 = vld [vmem:[%s2031_s23 + $0xbc] sm:$0x1] }
  0x59   : > { %v599_v29 = vrot.slane %v598_v43, 4  ;;  %v740_v28 = vrot.slane %v2065_v25, 5  ;;  %v743_v35 = vrot.slane %v2076_v36, 5  ;;  %v748_v42 = vsel %vm2356_vm5, %v1838_v4, %v747_v18  ;;  %v2377_v43 = vld [vmem:[%s2031_s23 + $0xb8] sm:$0xf] }
  0x5a   : > { %v2365_v27 = vpack.c.b16 %v993_v48, %v992_v17  ;;  %v609_v5 = vrot.slane %v608_v61, 4  ;;  %v749_v49 = vrot.slane %v747_v18, 4  ;;  %v1048_v47 = vunpack.c.l.b16 %v748_v42 }
  0x5b   : > { %v604_v40 = vsel %vm2069_vm2, %v599_v29, %v603_v53  ;;  %v741_v16 = vsel %vm2356_vm5, %v1837_v57, %v740_v28  ;;  %v742_v25 = vrot.slane %v740_v28, 4  ;;  %v664_v48 = vshrl.u32 %v2370_v39, 16 }
  0x5c   : > { %1040 = vrot.lane.b32.xlu1 %v2365_v27, %s1978_s24  ;;  %v614_v36 = vsel %vm2069_vm2, %v609_v5, %v613_v23  ;;  %v990_v61 = vunpack.c.l.b16 %v604_v40  ;;  %v751_v55 = vsel %vm2356_vm5, %v749_v49, %v750_v24  ;;  %v1046_v17 = vunpack.c.l.b16 %v741_v16 }
  0x5d   : > { %v991_v53 = vunpack.c.l.b16 %v614_v36  ;;  %v1049_v34 = vunpack.c.l.b16 %v751_v55  ;;  %v744_v4 = vsel %vm2356_vm5, %v742_v25, %v743_v35  ;;  %v667_v29 = vshll.u32 %v2370_v39, 16 }
  0x5e   : > { %v1047_v18 = vunpack.c.l.b16 %v744_v4  ;;  %v673_v57 = vshll.u32 %v2377_v43, 16  ;;  %v677_v23 = vshrl.u32 %v2377_v43, 16  ;;  %v666_v5 = vrot.slane %v664_v48, 4 }
  0x5f   : > { %v2394_v28 = vpack.c.b16 %v991_v53, %v990_v61  ;;  %v2396_v24 = vpack.c.b16 %v1049_v34, %v1048_v47  ;;  %v683_v42 = vshll.u32 %v2386_v31, 16  ;;  %v669_v40 = vrot.slane %v667_v29, 5 }
  0x60   : > { %v1078_v49 = vpack.c.b16 %v1047_v18, %v1046_v17  ;;  %v675_v16 = vrot.slane %v673_v57, 5  ;;  %v679_v35 = vrot.slane %v677_v23, 4  ;;  %v1841_v36 = vrot.slane %v2034_v0, 9 }
  0x61   : > { %1038 = vrot.lane.b32.xlu0 %v2394_v28, %s1978_s24  ;;  %1096 = vrot.lane.b32.xlu2 %v2396_v24, %s1979_s25  ;;  %v685_v25 = vrot.slane %v683_v42, 5  ;;  %v768_v47 = vrot.slane %v2037_v1, 5  ;;  %v771_v61 = vrot.slane %v2040_v2, 5  ;;  %v670_v55 = vor.u32 %v669_v40, %v666_v5 }
  0x62   : > { %v680_v53 = vor.u32 %v679_v35, %v675_v16  ;;  %v1840_v17 = vrot.slane %v2102_v63, 9  ;;  %v761_v34 = vrot.slane %v2112_v14, 5  ;;  %v764_v18 = vrot.slane %v2118_v19, 5 }
  0x63   : > { %v769_v4 = vsel %vm2356_vm5, %v1841_v36, %v768_v47  ;;  %v770_v48 = vrot.slane %v768_v47, 4  ;;  %v1839_v29 = vrot.slane %v2047_v7, 9  ;;  %v671_v0 = vrot.slane %v670_v55, 4 }
  0x64   : > { %1094 = vrot.lane.b32.xlu1 %v1078_v49, %s1979_s25  ;;  %v681_v1 = vrot.slane %v680_v53, 4  ;;  %v1054_v57 = vunpack.c.l.b16 %v769_v4  ;;  %v762_v2 = vsel %vm2356_vm5, %v1840_v17, %v761_v34  ;;  %v763_v14 = vrot.slane %v761_v34, 4 }
  0x65   : > { %v772_v63 = vsel %vm2356_vm5, %v770_v48, %v771_v61  ;;  %v1052_v23 = vunpack.c.l.b16 %v762_v2  ;;  %v754_v5 = vrot.slane %v2051_v9, 5  ;;  %v676_v19 = vsel %vm2069_vm2, %v671_v0, %v675_v16 }
  0x66   : > { %v686_v7 = vsel %vm2069_vm2, %v681_v1, %v685_v25  ;;  %v1055_v42 = vunpack.c.l.b16 %v772_v63  ;;  %v757_v49 = vrot.slane %v2054_v10, 5  ;;  %v996_v40 = vunpack.c.l.b16 %v676_v19 }
  0x67   : > { %v997_v35 = vunpack.c.l.b16 %v686_v7  ;;  %v765_v36 = vsel %vm2356_vm5, %v763_v14, %v764_v18  ;;  %v755_v47 = vsel %vm2356_vm5, %v1839_v29, %v754_v5  ;;  %v756_v55 = vrot.slane %v754_v5, 4 }
  0x68   : > { %v2427_v61 = vpack.c.b16 %v1055_v42, %v1054_v57  ;;  %v1053_v9 = vunpack.c.l.b16 %v765_v36  ;;  %v1050_v53 = vunpack.c.l.b16 %v755_v47  ;;  %v1844_v25 = vrot.slane %v2163_v21, 9 }
  0x69   : > { %v2429_v16 = vpack.c.b16 %v997_v35, %v996_v40  ;;  %v789_v17 = vrot.slane %v2174_v37, 5  ;;  %v792_v10 = vrot.slane %v2182_v45, 5  ;;  %v758_v4 = vsel %vm2356_vm5, %v756_v55, %v757_v49 }
  0x6a   : > { %1102 = vrot.lane.b32.xlu2 %v2427_v61, %s1979_s25  ;;  %v2436_v34 = vpack.c.b16 %v1053_v9, %v1052_v23  ;;  %v1843_v48 = vrot.slane %v2189_v58, 9  ;;  %v782_v18 = vrot.slane %v2196_v22, 5  ;;  %v1051_v21 = vunpack.c.l.b16 %v758_v4 }
  0x6b   : > { %1044 = vrot.lane.b32.xlu0 %v2429_v16, %s1978_s24  ;;  %v790_v37 = vsel %vm2356_vm5, %v1844_v25, %v789_v17  ;;  %v791_v45 = vrot.slane %v789_v17, 4  ;;  %v785_v29 = vrot.slane %v2204_v30, 5  ;;  %v1842_v22 = vrot.slane %v2085_v44, 9 }
  0x6c   : > { %1100 = vrot.lane.b32.xlu1 %v2436_v34, %s1979_s25  ;;  %v1060_v0 = vunpack.c.l.b16 %v790_v37  ;;  %v783_v1 = vsel %vm2356_vm5, %v1843_v48, %v782_v18  ;;  %v784_v58 = vrot.slane %v782_v18, 4  ;;  %v2452_v57 = vpack.c.b16 %v1051_v21, %v1050_v53 }
  0x6d   : > { %v793_v2 = vsel %vm2356_vm5, %v791_v45, %v792_v10  ;;  %v1058_v63 = vunpack.c.l.b16 %v783_v1  ;;  %v775_v14 = vrot.slane %v2093_v56, 5  ;;  %v778_v5 = vrot.slane %v2099_v62, 5 }
  0x6e   : > { %v1061_v23 = vunpack.c.l.b16 %v793_v2  ;;  %v786_v30 = vsel %vm2356_vm5, %v784_v58, %v785_v29  ;;  %v1847_v19 = vrot.slane %v2231_v13, 9  ;;  %v810_v49 = vrot.slane %v2244_v41, 5 }
  0x6f   : > { %v1059_v7 = vunpack.c.l.b16 %v786_v30  ;;  %v776_v44 = vsel %vm2356_vm5, %v1842_v22, %v775_v14  ;;  %v777_v42 = vrot.slane %v775_v14, 4  ;;  %v813_v35 = vrot.slane %v2248_v51, 5 }
  0x70   : > { %v2464_v40 = vpack.c.b16 %v1061_v23, %v1060_v0  ;;  %v1846_v56 = vrot.slane %v2254_v3, 9  ;;  %v811_v13 = vsel %vm2356_vm5, %v1847_v19, %v810_v49  ;;  %v812_v47 = vrot.slane %v810_v49, 4 }
  0x71   : > { %v2468_v36 = vpack.c.b16 %v1059_v7, %v1058_v63  ;;  %v779_v62 = vsel %vm2356_vm5, %v777_v42, %v778_v5  ;;  %v1056_v9 = vunpack.c.l.b16 %v776_v44  ;;  %v1066_v41 = vunpack.c.l.b16 %v811_v13  ;;  %v3164_v7 = vld [vmem:[#allocation8_spill] sm:$0xff] }
  0x72   : > { %1108 = vrot.lane.b32.xlu2 %v2464_v40, %s1979_s25  ;;  %v803_v55 = vrot.slane %v2262_v38, 5  ;;  %v806_v51 = vrot.slane %v2270_v15, 5  ;;  %v1057_v3 = vunpack.c.l.b16 %v779_v62  ;;  %v814_v53 = vsel %vm2356_vm5, %v812_v47, %v813_v35 }
  0x73   : > { %1098 = vrot.lane.b32.xlu0 %v2452_v57, %s1979_s25  ;;  %v1845_v25 = vrot.slane %v2144_v52, 9  ;;  %v796_v17 = vrot.slane %v2154_v8, 5  ;;  %v1067_v10 = vunpack.c.l.b16 %v814_v53  ;;  %v799_v15 = vrot.slane %v2160_v20, 5  ;;  %v3166_v53 = vld [vmem:[#allocation13_spill] sm:$0xff] }
  0x74   : > { %1106 = vrot.lane.b32.xlu1 %v2468_v36, %s1979_s25  ;;  %v804_v38 = vsel %vm2356_vm5, %v1846_v56, %v803_v55  ;;  %v805_v4 = vrot.slane %v803_v55, 4  ;;  %v1850_v21 = vrot.slane %v2297_v12, 9  ;;  %v831_v45 = vrot.slane %v2308_v6, 5  ;;  %v3165_v55 = vld [vmem:[#allocation11_spill] sm:$0xff] }
  0x75   : > { %v1064_v48 = vunpack.c.l.b16 %v804_v38  ;;  %v798_v18 = vrot.slane %v796_v17, 4  ;;  %v2490_v37 = vpack.c.b16 %v1067_v10, %v1066_v41  ;;  %v797_v8 = vsel %vm2356_vm5, %v1845_v25, %v796_v17  ;;  %v3167_v10 = vld [vmem:[#allocation14_spill] sm:$0xff] }
  0x76   : > { %v807_v52 = vsel %vm2356_vm5, %v805_v4, %v806_v51  ;;  %v2497_v29 = vpack.c.b16 %v1057_v3, %v1056_v9  ;;  %v834_v1 = vrot.slane %v2316_v54, 5  ;;  %v1849_v20 = vrot.slane %v2320_v33, 9 }
  0x77   : > { %v1065_v0 = vunpack.c.l.b16 %v807_v52  ;;  %v800_v12 = vsel %vm2356_vm5, %v798_v18, %v799_v15  ;;  %v832_v58 = vsel %vm2356_vm5, %v1850_v21, %v831_v45  ;;  %v833_v22 = vrot.slane %v831_v45, 4 }
  0x78   : > { %v824_v2 = vrot.slane %v2333_v59, 5  ;;  %v1062_v14 = vunpack.c.l.b16 %v797_v8  ;;  %v827_v6 = vrot.slane %v2336_v11, 5  ;;  %v1848_v23 = vrot.slane %v2208_v32, 9 }
  0x79   : > { %v2506_v63 = vpack.c.b16 %v1065_v0, %v1064_v48  ;;  %v835_v54 = vsel %vm2356_vm5, %v833_v22, %v834_v1  ;;  %v1072_v33 = vunpack.c.l.b16 %v832_v58  ;;  %v1063_v59 = vunpack.c.l.b16 %v800_v12  ;;  %v2546_v18 = vpop.permute.xlu2 %1022 }
  0x7a   : > { %1114 = vrot.lane.b32.xlu2 %v2490_v37, %s1979_s25  ;;  %v825_v30 = vsel %vm2356_vm5, %v1849_v20, %v824_v2  ;;  %v826_v5 = vrot.slane %v824_v2, 4  ;;  %v1073_v19 = vunpack.c.l.b16 %v835_v54  ;;  %v817_v11 = vrot.slane %v2223_v60, 5  ;;  %v2559_v20 = vld [vmem:[%s2031_s23 + $0xc] sm:$0xff]  ;;  %v2572_v2 = vld [vmem:[%s2031_s23 + $0xc0] sm:$0xf] }
  0x7b   : > { %1104 = vrot.lane.b32.xlu0 %v2497_v29, %s1979_s25  ;;  %v820_v32 = vrot.slane %v3164_v7, 5  ;;  %v1070_v42 = vunpack.c.l.b16 %v825_v30  ;;  %v1852_v49 = vrot.slane %v2370_v39, 9  ;;  %v845_v35 = vrot.slane %v2377_v43, 5 }
  0x7c   : > { %1112 = vrot.lane.b32.xlu1 %v2506_v63, %s1979_s25  ;;  %v828_v44 = vsel %vm2356_vm5, %v826_v5, %v827_v6  ;;  %v818_v62 = vsel %vm2356_vm5, %v1848_v23, %v817_v11  ;;  %v819_v13 = vrot.slane %v817_v11, 4  ;;  %v848_v60 = vrot.slane %v2386_v31, 5  ;;  %v2580_v6 = vld [vmem:[%s2031_s23 + $0x30] sm:$0xff]  ;;  %v2587_v5 = vld [vmem:[%s2031_s23 + $0x24] sm:$0xff] }
  0x7d   : > { %v1071_v56 = vunpack.c.l.b16 %v828_v44  ;;  %v2529_v47 = vpack.c.b16 %v1073_v19, %v1072_v33  ;;  %v1068_v9 = vunpack.c.l.b16 %v818_v62  ;;  %v847_v41 = vrot.slane %v845_v35, 4  ;;  %v2597_v44 = vld [vmem:[%s2031_s23 + $0x60] sm:$0xff] }
  0x7e   : > { %v1851_v51 = vrot.slane %v3165_v55, 9  ;;  %v2532_v3 = vpack.c.b16 %v1063_v59, %v1062_v14  ;;  %v821_v39 = vsel %vm2356_vm5, %v819_v13, %v820_v32  ;;  %v838_v43 = vrot.slane %v3166_v53, 5  ;;  %v2575_v14 = vld [vmem:[%s2031_s23 + $0xc4] sm:$0xf]  ;;  %v296_v32 = vld [vmem:[%s2031_s23 + $0xc8] sm:$0x1] }
  0x7f   : > { %v2537_v25 = vpack.c.b16 %v1071_v56, %v1070_v42  ;;  %v1069_v17 = vunpack.c.l.b16 %v821_v39  ;;  %v841_v38 = vrot.slane %v3167_v10, 5  ;;  %v846_v31 = vsel %vm2356_vm5, %v1852_v49, %v845_v35  ;;  %v2600_v49 = vld [vmem:[%s2031_s23 + $0x54] sm:$0xff]  ;;  %v2619_v39 = vld [vmem:[%s2031_s23 + $0xcc] sm:$0xf]  ;;  %v2622_v53 = vld [vmem:[%s2031_s23 + $0xd0] sm:$0xf] }
  0x80   : > { %v849_v4 = vsel %vm2356_vm5, %v847_v41, %v848_v60  ;;  %v839_v15 = vsel %vm2356_vm5, %v1851_v51, %v838_v43  ;;  %v840_v48 = vrot.slane %v838_v43, 4  ;;  %v1076_v45 = vunpack.c.l.b16 %v846_v31  ;;  %v2607_v60 = vld [vmem:[%s2031_s23 + $0x18] sm:$0xff] }
  0x81   : > { %v2550_v21 = vpack.c.b16 %v1069_v17, %v1068_v9  ;;  %v1074_v52 = vunpack.c.l.b16 %v839_v15  ;;  %v1077_v0 = vunpack.c.l.b16 %v849_v4  ;;  %v851_v23 = vshrl.u32 %v2572_v2, 16  ;;  %v2610_v9 = vld [vmem:[%s2031_s23 + $0x48] sm:$0xff]  ;;  %v2625_v43 = vld [vmem:[%s2031_s23 + $0x78] sm:$0xff] }
  0x82   : > { %1120 = vrot.lane.b32.xlu2 %v2529_v47, %s1979_s25  ;;  %v842_v8 = vsel %vm2356_vm5, %v840_v48, %v841_v38  ;;  %v854_v54 = vshll.u32 %v2572_v2, 16  ;;  %v860_v33 = vshll.u32 %v2575_v14, 16  ;;  %v864_v30 = vshrl.u32 %v2575_v14, 16  ;;  %v2632_v38 = vld [vmem:[%s2031_s23 + $0x3c] sm:$0xff] }
  0x83   : > { %1110 = vrot.lane.b32.xlu0 %v2532_v3, %s1979_s25  ;;  %v1075_v1 = vunpack.c.l.b16 %v842_v8  ;;  %v2563_v58 = vpack.c.b16 %v1077_v0, %v1076_v45  ;;  %v853_v59 = vrot.slane %v851_v23, 4  ;;  %v870_v13 = vshll.u32 %v296_v32, 16  ;;  %v2641_v8 = vld [vmem:[%s2031_s23 + $0x6c] sm:$0xff] }
  0x84   : > { %1118 = vrot.lane.b32.xlu1 %v2537_v25, %s1979_s25  ;;  %v856_v19 = vrot.slane %v854_v54, 5  ;;  %v862_v11 = vrot.slane %v860_v33, 5  ;;  %v866_v7 = vrot.slane %v864_v30, 4  ;;  %v885_v4 = vshrl.u32 %v2619_v39, 16 }
  0x85   : > { %v2561_v12 = vpack.c.b16 %v1075_v1, %v1074_v52  ;;  %v872_v51 = vrot.slane %v870_v13, 5  ;;  %v888_v15 = vshll.u32 %v2619_v39, 16  ;;  %v894_v48 = vshll.u32 %v2622_v53, 16 }
  0x86   : > { %v857_v56 = vor.u32 %v856_v19, %v853_v59  ;;  %v867_v62 = vor.u32 %v866_v7, %v862_v11  ;;  %v898_v52 = vshrl.u32 %v2622_v53, 16  ;;  %v879_v45 = vrot.slane %v2575_v14, 5  ;;  %v299_v59 = vld [vmem:[%s2031_s23 + $0xd4] sm:$0x1] }
  0x87   : > { %v2569_v22 = vpop.permute.xlu2 %1024  ;;  %v887_v23 = vrot.slane %v885_v4, 4  ;;  %v890_v54 = vrot.slane %v888_v15, 5  ;;  %v896_v33 = vrot.slane %v894_v48, 5  ;;  %v1853_v19 = vrot.slane %v2572_v2, 9  ;;  %v3168_v15 = vld [vmem:[#allocation7_spill] sm:$0xff] }
  0x88   : > { %v858_v41 = vrot.slane %v857_v56, 4  ;;  %v868_v55 = vrot.slane %v867_v62, 4  ;;  %v900_v30 = vrot.slane %v898_v52, 4  ;;  %v882_v14 = vrot.slane %v296_v32, 5 }
  0x89   : > { %v891_v62 = vor.u32 %v890_v54, %v887_v23  ;;  %v1854_v26 = vrot.slane %v2619_v39, 9 }
  0x8a   : > { %1129 = vrot.lane.b32.xlu2 %v2559_v20, %s1980_s26  ;;  %v863_v17 = vsel %vm2069_vm2, %v858_v41, %v862_v11  ;;  %v873_v10 = vsel %vm2069_vm2, %v868_v55, %v872_v51  ;;  %v881_v11 = vrot.slane %v879_v45, 4  ;;  %v901_v13 = vor.u32 %v900_v30, %v896_v33 }
  0x8b   : > { %1116 = vrot.lane.b32.xlu0 %v2550_v21, %s1979_s25  ;;  %v1161_v0 = vunpack.c.l.b16 %v863_v17  ;;  %v1162_v1 = vunpack.c.l.b16 %v873_v10  ;;  %v904_v41 = vshll.u32 %v299_v59, 16  ;;  %v880_v55 = vsel %vm2356_vm5, %v1853_v19, %v879_v45  ;;  %v1948_v45 = vld [vmem:[%s2031_s23 + $0xc0] sm:$0xff] }
  0x8c   : > { %1124 = vrot.lane.b32.xlu1 %v2563_v58, %s1979_s25  ;;  %v883_v51 = vsel %vm2356_vm5, %v881_v11, %v882_v14  ;;  %v892_v32 = vrot.slane %v891_v62, 4  ;;  %v902_v10 = vrot.slane %v901_v13, 4  ;;  %v1196_v48 = vunpack.c.l.b16 %v880_v55 }
  0x8d   : > { %v2652_v7 = vpack.c.b16 %v1162_v1, %v1161_v0  ;;  %v906_v4 = vrot.slane %v904_v41, 5  ;;  %v1197_v52 = vunpack.c.l.b16 %v883_v51  ;;  %v913_v30 = vrot.slane %v2622_v53, 5 }
  0x8e   : > { %v897_v0 = vsel %vm2069_vm2, %v892_v32, %v896_v33  ;;  %v916_v14 = vrot.slane %v299_v59, 5  ;;  %v3169_v59 = vld [vmem:[#allocation16_spill] sm:$0xff] }
  0x8f   : > { %v907_v1 = vsel %vm2069_vm2, %v902_v10, %v906_v4  ;;  %v2675_v23 = vpack.c.b16 %v1197_v52, %v1196_v48  ;;  %v1266_v19 = vunpack.c.l.b16 %v897_v0  ;;  %v915_v33 = vrot.slane %v913_v30, 4  ;;  %v2701_v10 = vld [vmem:[%s2031_s23 + $0xb4] sm:$0xff] }
  0x90   : > { %v1267_v11 = vunpack.c.l.b16 %v907_v1  ;;  %v914_v53 = vsel %vm2356_vm5, %v1854_v26, %v913_v30  ;;  %v1351_v48 = vsel %vm1336_vm6, %v2580_v6, %v2546_v18 }
  0x91   : > { %v917_v13 = vsel %vm2356_vm5, %v915_v33, %v916_v14  ;;  %v1932_v33 = vld [vmem:[%s2031_s23] sm:$0xff] }
  0x92   : > { %1135 = vrot.lane.b32.xlu2 %v2580_v6, %s1980_s26  ;;  %v1268_v62 = vpack.c.b16 %v1267_v11, %v1266_v19  ;;  %v1302_v32 = vunpack.c.l.b16 %v917_v13 }
  0x93   : > { %1122 = vrot.lane.b32.xlu0 %v2561_v12, %s1979_s25 }
  0x94   : > { %1133 = vrot.lane.b32.xlu1 %v2587_v5, %s1980_s26 }
  0x95   : > { %v1031_v42 = vpop.permute.xlu2 %1030 }
  0x96   : > { %v2604_v35 = vsel %vm1336_vm6, %v2597_v44, %v1031_v42  ;;  %v2654_v42 = vpop.permute.xlu1 %1018 }
  0x99   : > { %v2634_v31 = vpop.permute.xlu0 %1014 }
  0x9a   : > { %1141 = vrot.lane.b32.xlu2 %v2600_v49, %s1980_s26 }
  0x9b   : > { %1131 = vrot.lane.b32.xlu0 %v2607_v60, %s1980_s26 }
  0x9c   : > { %1139 = vrot.lane.b32.xlu1 %v2610_v9, %s1980_s26 }
  0xa2   : > { %1147 = vrot.lane.b32.xlu2 %v2625_v43, %s1980_s26 }
  0xa3   : > { %1137 = vrot.lane.b32.xlu0 %v2632_v38, %s1980_s26  ;;  %v2656_v56 = vpop.permute.xlu2 %1036 }
  0xa4   : > { %1145 = vrot.lane.b32.xlu1 %v2641_v8, %s1980_s26 }
  0xa9   : > { %v1017_v17 = vpop.permute.xlu0 %1016 }
  0xaa   : > { %1194 = vrot.lane.b32.xlu2 %v2652_v7, %s1981_s27  ;;  %v1342_v2 = vsel %vm1336_vm6, %v2559_v20, %v1017_v17  ;;  %v2677_v20 = vpop.permute.xlu1 %1020  ;;  %v1301_v17 = vunpack.c.l.b16 %v914_v53 }
  0xab   : > { %1143 = vrot.lane.b32.xlu0 %v2597_v44, %s1980_s26 }
  0xac   : > { %1178 = vrot.lane.b32.xlu1 %v3168_v15, %s1981_s27  ;;  %v1303_v4 = vpack.c.b16 %v1302_v32, %v1301_v17  ;;  %v2742_v17 = vld [vmem:[%s2031_s23 + $0x9c] sm:$0xff] }
  0xb1   : > { %v2679_v54 = vpop.permute.xlu2 %1042 }
  0xb2   : > { %1248 = vrot.lane.b32.xlu2 %v2641_v8, %s1982_s28  ;;  %v1029_v41 = vpop.permute.xlu1 %1028 }
  0xb3   : > { %1159 = vrot.lane.b32.xlu0 %v1948_v45, %s1980_s26  ;;  %v1360_v18 = vsel %vm1336_vm6, %v2600_v49, %v1029_v41  ;;  %v1339_v41 = vsel %vm1336_vm6, %v1932_v33, %v2634_v31 }
  0xb4   : > { %1229 = vrot.lane.b32.xlu1 %v2675_v23, %s1983_s29 }
  0xb7   : > { %v1027_v55 = vpop.permute.xlu0 %1026 }
  0xba   : > { %1299 = vrot.lane.b32.xlu2 %v1268_v62, %s1984_s30 }
  0xbb   : > { %1213 = vrot.lane.b32.xlu0 %v2532_v3, %s1983_s29  ;;  %v1097_v39 = vpop.permute.xlu2 %1096 }
  0xbc   : > { %1283 = vrot.lane.b32.xlu1 %v3169_v59, %s1984_s30  ;;  %v2698_v51 = vsel %vm1385_vm7, %v1342_v2, %v1097_v39 }
  0xbf   : > { %v1035_v2 = vpop.permute.xlu1 %1034 }
  0xc0   : > { %v1369_v62 = vsel %vm1336_vm6, %v2625_v43, %v1035_v2 }
  0xc2   : > { %1157 = vrot.lane.b32.xlu2 %v2701_v10, %s1980_s26 }
  0xc3   : > { %1264 = vrot.lane.b32.xlu0 %v1949_v50, %s1982_s28 }
  0xc4   : > { %1334 = vrot.lane.b32.xlu1 %v1303_v4, %s1985_s6  ;;  %v1103_v52 = vpop.permute.xlu2 %1102  ;;  %v1348_v4 = vsel %vm1336_vm6, %v2587_v5, %v2677_v20 }
  0xc5   : > { %v2712_v0 = vsel %vm1385_vm7, %v1351_v48, %v1103_v52  ;;  %v1033_v1 = vpop.permute.xlu0 %1032  ;;  %v2764_v52 = vld [vmem:[%s2031_s23 + $0xa8] sm:$0xff] }
  0xc6   : > { %v1366_v30 = vsel %vm1336_vm6, %v2641_v8, %v1033_v1  ;;  %v3170_v8 = vld [vmem:[#allocation9_spill] sm:$0xff]  ;;  %v1345_v1 = vsel %vm1336_vm6, %v2607_v60, %v2654_v42 }
  0xca   : > { %1211 = vrot.lane.b32.xlu2 %v2464_v40, %s1983_s29 }
  0xcb   : > { %1318 = vrot.lane.b32.xlu0 %v2506_v63, %s1985_s6 }
  0xcc   : > { %1192 = vrot.lane.b32.xlu1 %v2429_v16, %s1981_s27  ;;  %v1109_v19 = vpop.permute.xlu2 %1108 }
  0xcd   : > { %v2725_v11 = vsel %vm1385_vm7, %v1360_v18, %v1109_v19 }
  0xce   : > { %v1041_v26 = vpop.permute.xlu1 %1040 }
  0xd2   : > { %1262 = vrot.lane.b32.xlu2 %v1948_v45, %s1982_s28 }
  0xd3   : > { %1176 = vrot.lane.b32.xlu0 %v3170_v8, %s1981_s27  ;;  %v1039_v14 = vpop.permute.xlu0 %1038 }
  0xd4   : > { %1246 = vrot.lane.b32.xlu1 %v2597_v44, %s1982_s28  ;;  %v1115_v53 = vpop.permute.xlu2 %1114  ;;  %v1378_v44 = vsel %vm1336_vm6, %v2742_v17, %v1041_v26  ;;  %v1357_v26 = vsel %vm1336_vm6, %v2610_v9, %v1027_v55  ;;  %v1354_v55 = vsel %vm1336_vm6, %v2632_v38, %v2569_v22 }
  0xd5   : > { %v2736_v13 = vsel %vm1385_vm7, %v1369_v62, %v1115_v53 }
  0xd6   : > { %v1095_v39 = vpop.permute.xlu1 %1094 }
  0xd7   : > { %v1387_v45 = vsel %vm1385_vm7, %v1339_v41, %v1095_v39 }
  0xda   : > { %1316 = vrot.lane.b32.xlu2 %v2532_v3, %s1985_s6 }
  0xdb   : > { %1227 = vrot.lane.b32.xlu0 %v2563_v58, %s1983_s29 }
  0xdc   : > { %1297 = vrot.lane.b32.xlu1 %v2652_v7, %s1984_s30  ;;  %v1121_v32 = vpop.permute.xlu2 %1120  ;;  %v3171_v7 = vld [vmem:[#allocation10_spill] sm:$0xff] }
  0xdd   : > { %v1045_v50 = vpop.permute.xlu0 %1044  ;;  %v2753_v31 = vsel %vm1385_vm7, %v1378_v44, %v1121_v32  ;;  %v2799_v32 = vld [vmem:[%s2031_s23 + $0x90] sm:$0xff] }
  0xde   : > { %v2760_v3 = vsel %vm1336_vm6, %v2701_v10, %v1045_v50  ;;  %v1101_v48 = vpop.permute.xlu1 %1100  ;;  %v1375_v50 = vsel %vm1336_vm6, %v2799_v32, %v1039_v14 }
  0xdf   : > { %v1393_v2 = vsel %vm1385_vm7, %v1348_v4, %v1101_v48 }
  0xe2   : > { %1174 = vrot.lane.b32.xlu2 %v3171_v7, %s1981_s27 }
  0xe3   : > { %1281 = vrot.lane.b32.xlu0 %v3168_v15, %s1984_s30 }
  0xe4   : > { %1155 = vrot.lane.b32.xlu1 %v2764_v52, %s1980_s26  ;;  %v1130_v20 = vpop.permute.xlu2 %1129 }
  0xe5   : > { %v1099_v18 = vpop.permute.xlu0 %1098  ;;  %v2776_v19 = vsel %vm1418_vm8, %v1387_v45, %v1130_v20 }
  0xe6   : > { %v1391_v33 = vsel %vm1385_vm7, %v1345_v1, %v1099_v18  ;;  %v1107_v62 = vpop.permute.xlu1 %1106 }
  0xe7   : > { %v2782_v15 = vsel %vm1385_vm7, %v1357_v26, %v1107_v62 }
  0xea   : > { %1225 = vrot.lane.b32.xlu2 %v2561_v12, %s1983_s29 }
  0xeb   : > { %1332 = vrot.lane.b32.xlu0 %v2675_v23, %s1985_s6 }
  0xec   : > { %1209 = vrot.lane.b32.xlu1 %v2468_v36, %s1983_s29  ;;  %v1136_v42 = vpop.permute.xlu2 %1135 }
  0xed   : > { %v1105_v53 = vpop.permute.xlu0 %1104  ;;  %v2794_v41 = vsel %vm1418_vm8, %v1393_v2, %v1136_v42 }
  0xee   : > { %v1397_v39 = vsel %vm1385_vm7, %v1354_v55, %v1105_v53  ;;  %v1113_v45 = vpop.permute.xlu1 %1112 }
  0xef   : > { %v1405_v44 = vsel %vm1385_vm7, %v1366_v30, %v1113_v45 }
  0xf2   : > { %1279 = vrot.lane.b32.xlu2 %v3170_v8, %s1984_s30  ;;  %v2817_v8 = vld [vmem:[%s2031_s23 + $0x84] sm:$0xff] }
  0xf3   : > { %1190 = vrot.lane.b32.xlu0 %v2346_v46, %s1981_s27 }
  0xf4   : > { %1260 = vrot.lane.b32.xlu1 %v2701_v10, %s1982_s28  ;;  %v2807_v22 = vpop.permute.xlu2 %1141 }
  0xf5   : > { %v1111_v23 = vpop.permute.xlu0 %1110 }
  0xf6   : > { %v1403_v30 = vsel %vm1385_vm7, %v2604_v35, %v1111_v23  ;;  %v1119_v4 = vpop.permute.xlu1 %1118  ;;  %v1372_v35 = vsel %vm1336_vm6, %v2817_v8, %v2656_v56 }
  0xf7   : > { %v2814_v48 = vsel %vm1385_vm7, %v1375_v50, %v1119_v4 }
  0xfa   : > { %1330 = vrot.lane.b32.xlu2 %v2563_v58, %s1985_s6 }
  0xfb   : > { %1244 = vrot.lane.b32.xlu0 %v2600_v49, %s1982_s28  ;;  %v1381_v49 = vsel %vm1336_vm6, %v2764_v52, %v2679_v54 }
  0xfc   : > { %1314 = vrot.lane.b32.xlu1 %v2464_v40, %s1985_s6  ;;  %v1148_v10 = vpop.permute.xlu2 %1147  ;;  %v3172_v40 = vld [vmem:[#allocation4_spill] sm:$0xff] }
  0xfd   : > { %v1117_v14 = vpop.permute.xlu0 %1116  ;;  %v2829_v2 = vsel %vm1418_vm8, %v1405_v44, %v1148_v10 }
  0xfe   : > { %v2832_v20 = vsel %vm1385_vm7, %v1372_v35, %v1117_v14  ;;  %v1125_v1 = vpop.permute.xlu1 %1124 }
 0x102   : > { %1188 = vrot.lane.b32.xlu2 %v2365_v27, %s1981_s27 }
 0x103   : > { %1295 = vrot.lane.b32.xlu0 %v2429_v16, %s1984_s30 }
 0x104   : > { %1172 = vrot.lane.b32.xlu1 %v3172_v40, %s1981_s27  ;;  %v1195_v58 = vpop.permute.xlu2 %1194 }
 0x105   : > { %v1123_v56 = vpop.permute.xlu0 %1122 }
 0x106   : > { %v2844_v18 = vsel %vm1385_vm7, %v1381_v49, %v1123_v56  ;;  %v1134_v26 = vpop.permute.xlu1 %1133 }
 0x107   : > { %v2847_v62 = vsel %vm1418_vm8, %v1391_v33, %v1134_v26 }
 0x10a   : > { %1242 = vrot.lane.b32.xlu2 %v2610_v9, %s1982_s28 }
 0x10b   : > { %1153 = vrot.lane.b32.xlu0 %v2742_v17, %s1980_s26 }
 0x10c   : > { %1223 = vrot.lane.b32.xlu1 %v2529_v47, %s1983_s29  ;;  %v1249_v16 = vpop.permute.xlu2 %1248 }
 0x10d   : > { %v1132_v42 = vpop.permute.xlu0 %1131 }
 0x10e   : > { %v2857_v54 = vsel %vm1418_vm8, %v2698_v51, %v1132_v42  ;;  %v1140_v55 = vpop.permute.xlu1 %1139  ;;  %v3174_v42 = vld [vmem:[#allocation5_spill] sm:$0xff] }
 0x10f   : > { %v2860_v53 = vsel %vm1418_vm8, %v1397_v39, %v1140_v55 }
 0x112   : > { %1293 = vrot.lane.b32.xlu2 %v2346_v46, %s1984_s30 }
 0x113   : > { %1207 = vrot.lane.b32.xlu0 %v2497_v29, %s1983_s29 }
 0x114   : > { %1277 = vrot.lane.b32.xlu1 %v3171_v7, %s1984_s30  ;;  %v1300_v9 = vpop.permute.xlu2 %1299 }
 0x115   : > { %v1138_v33 = vpop.permute.xlu0 %1137 }
 0x116   : > { %v2870_v45 = vsel %vm1418_vm8, %v2712_v0, %v1138_v33  ;;  %v1146_v51 = vpop.permute.xlu1 %1145 }
 0x117   : > { %v2873_v44 = vsel %vm1418_vm8, %v1403_v30, %v1146_v51 }
 0x11a   : > { %1151 = vrot.lane.b32.xlu2 %v2799_v32, %s1980_s26 }
 0x11b   : > { %1258 = vrot.lane.b32.xlu0 %v2764_v52, %s1982_s28 }
 0x11c   : > { %1328 = vrot.lane.b32.xlu1 %v2561_v12, %s1985_s6  ;;  %v2881_v46 = vpop.permute.xlu2 %1157  ;;  %v3173_v12 = vld [vmem:[#allocation2_spill] sm:$0xff] }
 0x11d   : > { %v1144_v7 = vpop.permute.xlu0 %1143 }
 0x11e   : > { %v1179_v39 = vpop.permute.xlu1 %1178 }
 0x122   : > { %1205 = vrot.lane.b32.xlu2 %v2427_v61, %s1983_s29 }
 0x123   : > { %1312 = vrot.lane.b32.xlu0 %v2468_v36, %s1985_s6  ;;  %v1417_v36 = vsel %vm1385_vm7, %v2760_v3, %v1125_v1 }
 0x124   : > { %1186 = vrot.lane.b32.xlu1 %v2394_v28, %s1981_s27  ;;  %v1212_v0 = vpop.permute.xlu2 %1211 }
 0x125   : > { %v1160_v23 = vpop.permute.xlu0 %1159 }
 0x126   : > { %v1230_v50 = vpop.permute.xlu1 %1229  ;;  %v1450_v10 = vsel %vm1418_vm8, %v1417_v36, %v1160_v23 }
 0x12a   : > { %1256 = vrot.lane.b32.xlu2 %v2742_v17, %s1982_s28  ;;  %v1483_v17 = vsel %vm1451_vm9, %v1450_v10, %v1195_v58 }
 0x12b   : > { %1170 = vrot.lane.b32.xlu0 %v3173_v12, %s1981_s27  ;;  %v1516_v35 = vsel %vm1484_vm10, %v1483_v17, %v1230_v50  ;;  %v3175_v50 = vld [vmem:[#allocation12_spill] sm:$0xff] }
 0x12c   : > { %1240 = vrot.lane.b32.xlu1 %v2632_v38, %s1982_s28  ;;  %v2895_v52 = vpop.permute.xlu2 %1262 }
 0x12d   : > { %v1214_v30 = vpop.permute.xlu0 %1213 }
 0x12e   : > { %v1284_v4 = vpop.permute.xlu1 %1283 }
 0x132   : > { %1310 = vrot.lane.b32.xlu2 %v2497_v29, %s1985_s6  ;;  %v1434_v29 = vsel %vm1418_vm8, %v2725_v11, %v1144_v7 }
 0x133   : > { %1221 = vrot.lane.b32.xlu0 %v2537_v25, %s1983_s29  ;;  %v1467_v58 = vsel %vm1451_vm9, %v1434_v29, %v1179_v39 }
 0x134   : > { %1291 = vrot.lane.b32.xlu1 %v2365_v27, %s1984_s30  ;;  %v1317_v38 = vpop.permute.xlu2 %1316  ;;  %v1500_v27 = vsel %vm1484_vm10, %v1467_v58, %v1214_v30 }
 0x135   : > { %v1265_v3 = vpop.permute.xlu0 %1264  ;;  %v1533_v55 = vsel %vm1517_vm12, %v1500_v27, %v1249_v16 }
 0x136   : > { %v1549_v14 = vsel %vm1517_vm12, %v1516_v35, %v1265_v3  ;;  %v1335_v1 = vpop.permute.xlu1 %1334 }
 0x137   : > { %v1582_v49 = vsel %vm1550_vm11, %v1549_v14, %v1300_v9  ;;  %v1566_v9 = vsel %vm1550_vm11, %v1533_v55, %v1284_v4 }
 0x138   : > { %v1615_v56 = vsel %vm1583_vm13, %v1582_v49, %v1335_v1 }
 0x139   : > { %v1657_v26 = vsel %vm1623_vm14, %v1615_v56, 0 }
 0x13a   : > { %1672 = vmatpush.bf16.xpose.msra.mxu1 %v1657_v26  ;;  %1168 = vrot.lane.b32.xlu2 %v3174_v42, %s1981_s27 }
 0x13b   : > { %1275 = vrot.lane.b32.xlu0 %v3172_v40, %s1984_s30 }
 0x13c   : > { %1149 = vrot.lane.b32.xlu1 %v2817_v8, %s1980_s26  ;;  %v1175_v11 = vpop.permute.xlu2 %1174 }
 0x13d   : > { %v1319_v33 = vpop.permute.xlu0 %1318  ;;  %v1463_v26 = vsel %vm1451_vm9, %v2860_v53, %v1175_v11 }
 0x13e   : > { %v1599_v51 = vsel %vm1583_vm13, %v1566_v9, %v1319_v33  ;;  %v1193_v7 = vpop.permute.xlu1 %1192 }
 0x13f   : > { %v1641_v39 = vsel %vm1623_vm14, %v1599_v51, 0 }
 0x140   : > { %1659 = vmatpush.bf16.xpose.msra.mxu0 %v1641_v39 }
 0x142   : > { %1219 = vrot.lane.b32.xlu2 %v2550_v21, %s1983_s29 }
 0x143   : > { %1326 = vrot.lane.b32.xlu0 %v2529_v47, %s1985_s6  ;;  %v1432_v47 = vsel %vm1418_vm8, %v2782_v15, %v2807_v22  ;;  %v1448_v22 = vsel %vm1418_vm8, %v2844_v18, %v2881_v46  ;;  %v3176_v18 = vld [vmem:[#allocation15_spill] sm:$0xff] }
 0x144   : > { %1203 = vrot.lane.b32.xlu1 %v2436_v34, %s1983_s29  ;;  %v1226_v40 = vpop.permute.xlu2 %1225 }
 0x145   : > { %v1177_v16 = vpop.permute.xlu0 %1176 }
 0x146   : > { %v1247_v23 = vpop.permute.xlu1 %1246  ;;  %v1465_v10 = vsel %vm1451_vm9, %v1432_v47, %v1177_v16  ;;  %v3178_v16 = vld [vmem:[#allocation6_spill] sm:$0xff] }
 0x14a   : > { %1273 = vrot.lane.b32.xlu2 %v3173_v12, %s1984_s30  ;;  %v1498_v12 = vsel %vm1484_vm10, %v1465_v10, %v1212_v0 }
 0x14b   : > { %1184 = vrot.lane.b32.xlu0 %v3175_v50, %s1981_s27  ;;  %v1531_v17 = vsel %vm1517_vm12, %v1498_v12, %v1247_v23 }
 0x14c   : > { %1254 = vrot.lane.b32.xlu1 %v2799_v32, %s1982_s28  ;;  %v1280_v30 = vpop.permute.xlu2 %1279 }
 0x14d   : > { %v1228_v4 = vpop.permute.xlu0 %1227 }
 0x14e   : > { %v1298_v36 = vpop.permute.xlu1 %1297 }
 0x152   : > { %1324 = vrot.lane.b32.xlu2 %v2537_v25, %s1985_s6 }
 0x153   : > { %1238 = vrot.lane.b32.xlu0 %v2580_v6, %s1982_s28  ;;  %v1481_v6 = vsel %vm1451_vm9, %v1448_v22, %v1193_v7 }
 0x154   : > { %1308 = vrot.lane.b32.xlu1 %v2427_v61, %s1985_s6  ;;  %v1331_v32 = vpop.permute.xlu2 %1330  ;;  %v1514_v14 = vsel %vm1484_vm10, %v1481_v6, %v1228_v4 }
 0x155   : > { %v1282_v35 = vpop.permute.xlu0 %1281  ;;  %v1547_v61 = vsel %vm1517_vm12, %v1514_v14, %v2895_v52 }
 0x156   : > { %v1564_v3 = vsel %vm1550_vm11, %v1531_v17, %v1282_v35  ;;  %v1156_v15 = vpop.permute.xlu1 %1155  ;;  %v1580_v46 = vsel %vm1550_vm11, %v1547_v61, %v1298_v36 }
 0x157   : > { %v1597_v25 = vsel %vm1583_vm13, %v1564_v3, %v1317_v38 }
 0x158   : > { %v1639_v0 = vsel %vm1623_vm14, %v1597_v25, 0 }
 0x159   : > { %1660 = vmatpush.bf16.xpose.msra.mxu0 %v1639_v0 }
 0x15a   : > { %1201 = vrot.lane.b32.xlu2 %v2452_v57, %s1983_s29 }
 0x15b   : > { %1289 = vrot.lane.b32.xlu0 %v2394_v28, %s1984_s30  ;;  %v3177_v28 = vld [vmem:[#allocation3_spill] sm:$0xff] }
 0x15c   : > { %1182 = vrot.lane.b32.xlu1 %v3176_v18, %s1981_s27  ;;  %v1189_v29 = vpop.permute.xlu2 %1188 }
 0x15d   : > { %v1333_v38 = vpop.permute.xlu0 %1332 }
 0x15e   : > { %v1613_v1 = vsel %vm1583_vm13, %v1580_v46, %v1333_v38  ;;  %v1210_v49 = vpop.permute.xlu1 %1209 }
 0x15f   : > { %v1655_v58 = vsel %vm1623_vm14, %v1613_v1, 0 }
 0x160   : > { %1673 = vmatpush.bf16.xpose.msra.mxu1 %v1655_v58 }
 0x162   : > { %1252 = vrot.lane.b32.xlu2 %v2817_v8, %s1982_s28  ;;  %v1496_v8 = vsel %vm1484_vm10, %v1463_v26, %v1210_v49 }
 0x163   : > { %1166 = vrot.lane.b32.xlu0 %v3177_v28, %s1981_s27 }
 0x164   : > { %1236 = vrot.lane.b32.xlu1 %v2587_v5, %s1982_s28  ;;  %v1243_v27 = vpop.permute.xlu2 %1242 }
 0x165   : > { %v1191_v52 = vpop.permute.xlu0 %1190 }
 0x166   : > { %v1261_v56 = vpop.permute.xlu1 %1260 }
 0x16a   : > { %1306 = vrot.lane.b32.xlu2 %v2436_v34, %s1985_s6  ;;  %v1446_v34 = vsel %vm1418_vm8, %v2753_v31, %v1156_v15 }
 0x16b   : > { %1217 = vrot.lane.b32.xlu0 %v2490_v37, %s1983_s29  ;;  %v1479_v7 = vsel %vm1451_vm9, %v1446_v34, %v1191_v52 }
 0x16c   : > { %1287 = vrot.lane.b32.xlu1 %v3175_v50, %s1984_s30  ;;  %v1294_v11 = vpop.permute.xlu2 %1293  ;;  %v1512_v39 = vsel %vm1484_vm10, %v1479_v7, %v1226_v40 }
 0x16d   : > { %v1245_v55 = vpop.permute.xlu0 %1244  ;;  %v1545_v31 = vsel %vm1517_vm12, %v1512_v39, %v1261_v56 }
 0x16e   : > { %v1529_v5 = vsel %vm1517_vm12, %v1496_v8, %v1245_v55  ;;  %v1315_v9 = vpop.permute.xlu1 %1314 }
 0x16f   : > { %v1562_v33 = vsel %vm1550_vm11, %v1529_v5, %v1280_v30 }
 0x170   : > { %v1595_v51 = vsel %vm1583_vm13, %v1562_v33, %v1315_v9 }
 0x171   : > { %v1637_v53 = vsel %vm1623_vm14, %v1595_v51, 0 }
 0x172   : > { %1661 = vmatpush.bf16.xpose.msra.mxu0 %v1637_v53  ;;  %1180 = vrot.lane.b32.xlu2 %v3169_v59, %s1981_s27 }
 0x173   : > { %1271 = vrot.lane.b32.xlu0 %v3174_v42, %s1984_s30 }
 0x174   : > { %1164 = vrot.lane.b32.xlu1 %v3178_v16, %s1981_s27  ;;  %v1152_v59 = vpop.permute.xlu2 %1151 }
 0x175   : > { %v1296_v23 = vpop.permute.xlu0 %1295  ;;  %v1442_v26 = vsel %vm1418_vm8, %v2832_v20, %v1152_v59 }
 0x176   : > { %v1578_v50 = vsel %vm1550_vm11, %v1545_v31, %v1296_v23  ;;  %v1173_v30 = vpop.permute.xlu1 %1172 }
 0x177   : > { %v1611_v4 = vsel %vm1583_vm13, %v1578_v50, %v1331_v32  ;;  %v1461_v3 = vsel %vm1451_vm9, %v2870_v45, %v1173_v30 }
 0x178   : > { %v1653_v36 = vsel %vm1623_vm14, %v1611_v4, 0 }
 0x179   : > { %1674 = vmatpush.bf16.xpose.msra.mxu1 %v1653_v36 }
 0x17a   : > { %1234 = vrot.lane.b32.xlu2 %v2607_v60, %s1982_s28 }
 0x17b   : > { %1322 = vrot.lane.b32.xlu0 %v2550_v21, %s1985_s6 }
 0x17c   : > { %1215 = vrot.lane.b32.xlu1 %v2506_v63, %s1983_s29  ;;  %v1206_v60 = vpop.permute.xlu2 %1205 }
 0x17d   : > { %v1154_v42 = vpop.permute.xlu0 %1153 }
 0x17e   : > { %v1224_v40 = vpop.permute.xlu1 %1223  ;;  %v1444_v21 = vsel %vm1418_vm8, %v2814_v48, %v1154_v42 }
 0x17f   : > { %v1477_v63 = vsel %vm1451_vm9, %v1444_v21, %v1189_v29 }
 0x180   : > { %v1510_v12 = vsel %vm1484_vm10, %v1477_v63, %v1224_v40 }
 0x182   : > { %1285 = vrot.lane.b32.xlu2 %v3176_v18, %s1984_s30 }
 0x183   : > { %1199 = vrot.lane.b32.xlu0 %v2396_v24, %s1983_s29 }
 0x184   : > { %1269 = vrot.lane.b32.xlu1 %v3177_v28, %s1984_s30  ;;  %v1257_v48 = vpop.permute.xlu2 %1256 }
 0x185   : > { %v1208_v47 = vpop.permute.xlu0 %1207 }
 0x186   : > { %v1278_v10 = vpop.permute.xlu1 %1277 }
 0x18b   : > { %1250 = vrot.lane.b32.xlu0 %v2625_v43, %s1982_s28  ;;  %v1494_v43 = vsel %vm1484_vm10, %v1461_v3, %v1208_v47 }
 0x18c   : > { %1320 = vrot.lane.b32.xlu1 %v2490_v37, %s1985_s6  ;;  %v1527_v37 = vsel %vm1517_vm12, %v1494_v43, %v1243_v27  ;;  %v1311_v61 = vpop.permute.xlu2 %1310 }
 0x18d   : > { %v1259_v24 = vpop.permute.xlu0 %1258  ;;  %v1560_v25 = vsel %vm1550_vm11, %v1527_v37, %v1278_v10 }
 0x18e   : > { %v1543_v32 = vsel %vm1517_vm12, %v1510_v12, %v1259_v24  ;;  %v1329_v17 = vpop.permute.xlu1 %1328 }
 0x18f   : > { %v1576_v35 = vsel %vm1550_vm11, %v1543_v32, %v1294_v11 }
 0x190   : > { %v1609_v15 = vsel %vm1583_vm13, %v1576_v35, %v1329_v17 }
 0x191   : > { %v1651_v22 = vsel %vm1623_vm14, %v1609_v15, 0 }
 0x192   : > { %1675 = vmatpush.bf16.xpose.msra.mxu1 %v1651_v22 }
 0x193   : > { %1304 = vrot.lane.b32.xlu0 %v2452_v57, %s1985_s6 }
 0x194   : > { %v1169_v38 = vpop.permute.xlu2 %1168 }
 0x195   : > { %v1313_v6 = vpop.permute.xlu0 %1312  ;;  %v1457_v31 = vsel %vm1451_vm9, %v2847_v62, %v1169_v38 }
 0x196   : > { %v1593_v0 = vsel %vm1583_vm13, %v1560_v25, %v1313_v6  ;;  %v1187_v14 = vpop.permute.xlu1 %1186 }
 0x197   : > { %v1635_v45 = vsel %vm1623_vm14, %v1593_v0, 0  ;;  %v1475_v55 = vsel %vm1451_vm9, %v1442_v26, %v1187_v14 }
 0x198   : > { %1662 = vmatpush.bf16.xpose.msra.mxu0 %v1635_v45 }
 0x19c   : > { %v1220_v52 = vpop.permute.xlu2 %1219 }
 0x19d   : > { %v1171_v18 = vpop.permute.xlu0 %1170 }
 0x19e   : > { %v1241_v46 = vpop.permute.xlu1 %1240  ;;  %v1459_v57 = vsel %vm1451_vm9, %v2794_v41, %v1171_v18 }
 0x19f   : > { %v1492_v49 = vsel %vm1484_vm10, %v1459_v57, %v1206_v60 }
 0x1a0   : > { %v1525_v58 = vsel %vm1517_vm12, %v1492_v49, %v1241_v46 }
 0x1a4   : > { %v1274_v20 = vpop.permute.xlu2 %1273 }
 0x1a5   : > { %v1222_v1 = vpop.permute.xlu0 %1221 }
 0x1a6   : > { %v1292_v29 = vpop.permute.xlu1 %1291  ;;  %v1508_v41 = vsel %vm1484_vm10, %v1475_v55, %v1222_v1 }
 0x1a7   : > { %v1541_v9 = vsel %vm1517_vm12, %v1508_v41, %v1257_v48 }
 0x1a8   : > { %v1574_v33 = vsel %vm1550_vm11, %v1541_v9, %v1292_v29 }
 0x1ac   : > { %v1325_v16 = vpop.permute.xlu2 %1324 }
 0x1ad   : > { %v1276_v28 = vpop.permute.xlu0 %1275 }
 0x1ae   : > { %v1558_v56 = vsel %vm1550_vm11, %v1525_v58, %v1276_v28  ;;  %v1150_v27 = vpop.permute.xlu1 %1149  ;;  %v1986_v58 = vmov 0  }
 0x1af   : > { %v1591_v8 = vsel %vm1583_vm13, %v1558_v56, %v1311_v61  ;;  %v1440_v59 = vsel %vm1418_vm8, %v2736_v13, %v1150_v27  ;;  %1968 = vset.pattern.permute.xlu2 %v1986_v58  ;;  %1969 = vset.pattern.permute.xlu0 %v1986_v58 }
 0x1b0   : > { %v1633_v5 = vsel %vm1623_vm14, %v1591_v8, 0 }
 0x1b1   : > { %1663 = vmatpush.bf16.xpose.msra.mxu0 %v1633_v5 }
 0x1b4   : > { %v1202_v60 = vpop.permute.xlu2 %1201 }
 0x1b5   : > { %v1327_v34 = vpop.permute.xlu0 %1326 }
 0x1b6   : > { %v1607_v51 = vsel %vm1583_vm13, %v1574_v33, %v1327_v34  ;;  %v1204_v7 = vpop.permute.xlu1 %1203 }
 0x1b7   : > { %v1649_v53 = vsel %vm1623_vm14, %v1607_v51, 0  ;;  %v1490_v23 = vsel %vm1484_vm10, %v1457_v31, %v1204_v7 }
 0x1b8   : > { %1676 = vmatpush.bf16.xpose.msra.mxu1 %v1649_v53 }
 0x1bc   : > { %v1253_v17 = vpop.permute.xlu2 %1252 }
 0x1bd   : > { %v1185_v11 = vpop.permute.xlu0 %1184 }
 0x1be   : > { %v1255_v39 = vpop.permute.xlu1 %1254  ;;  %v1473_v40 = vsel %vm1451_vm9, %v1440_v59, %v1185_v11 }
 0x1bf   : > { %v1506_v62 = vsel %vm1484_vm10, %v1473_v40, %v1220_v52 }
 0x1c0   : > { %v1539_v10 = vsel %vm1517_vm12, %v1506_v62, %v1255_v39  ;;  %v1616_v39 = vld [vmem:[%s3115_s1] sm:$0x3] }
 0x1c4   : > { %v1307_v15 = vpop.permute.xlu2 %1306 }
 0x1c5   : > { %v1239_v50 = vpop.permute.xlu0 %1238 }
 0x1c6   : > { %v1523_v30 = vsel %vm1517_vm12, %v1490_v23, %v1239_v50  ;;  %v1309_v4 = vpop.permute.xlu1 %1308 }
 0x1c7   : > { %v1556_v36 = vsel %vm1550_vm11, %v1523_v30, %v1274_v20 }
 0x1c8   : > { %v1589_v42 = vsel %vm1583_vm13, %v1556_v36, %v1309_v4 }
 0x1c9   : > { %v1631_v47 = vsel %vm1623_vm14, %v1589_v42, 0 }
 0x1ca   : > { %1664 = vmatpush.bf16.xpose.msra.mxu0 %v1631_v47 }
 0x1cc   : > { %v1181_v46 = vpop.permute.xlu2 %1180 }
 0x1cd   : > { %v1290_v21 = vpop.permute.xlu0 %1289  ;;  %v1469_v27 = vsel %vm1451_vm9, %v2873_v44, %v1181_v46 }
 0x1ce   : > { %v1572_v63 = vsel %vm1550_vm11, %v1539_v10, %v1290_v21  ;;  %v1183_v12 = vpop.permute.xlu1 %1182 }
 0x1cf   : > { %v1605_v24 = vsel %vm1583_vm13, %v1572_v63, %v1325_v16  ;;  %v1471_v45 = vsel %vm1451_vm9, %v2829_v2, %v1183_v12  ;;  %v1617_v2 = vld [vmem:[%s3116_s2] sm:$0xf] }
 0x1d0   : > { %v1647_v13 = vsel %vm1623_vm14, %v1605_v24, 0  ;;  %1620 = vperm.xlu2 %1968, %v1617_v2  }
 0x1d1   : > { %1677 = vmatpush.bf16.xpose.msra.mxu1 %v1647_v13 }
 0x1d4   : > { %v1235_v28 = vpop.permute.xlu2 %1234 }
 0x1d5   : > { %v1167_v32 = vpop.permute.xlu0 %1166 }
 0x1d6   : > { %v1237_v35 = vpop.permute.xlu1 %1236  ;;  %v1455_v43 = vsel %vm1451_vm9, %v2857_v54, %v1167_v32 }
 0x1d7   : > { %v1488_v22 = vsel %vm1484_vm10, %v1455_v43, %v1202_v60 }
 0x1d8   : > { %v1521_v37 = vsel %vm1517_vm12, %v1488_v22, %v1237_v35 }
 0x1dc   : > { %v1286_v26 = vpop.permute.xlu2 %1285 }
 0x1dd   : > { %v1218_v3 = vpop.permute.xlu0 %1217 }
 0x1de   : > { %v1288_v48 = vpop.permute.xlu1 %1287  ;;  %v1504_v18 = vsel %vm1484_vm10, %v1471_v45, %v1218_v3 }
 0x1df   : > { %v1537_v54 = vsel %vm1517_vm12, %v1504_v18, %v1253_v17 }
 0x1e0   : > { %v1570_v38 = vsel %vm1550_vm11, %v1537_v54, %v1288_v48 }
 0x1e5   : > { %v1272_v25 = vpop.permute.xlu0 %1271 }
 0x1e6   : > { %v1554_v6 = vsel %vm1550_vm11, %v1521_v37, %v1272_v25  ;;  %v1165_v0 = vpop.permute.xlu1 %1164 }
 0x1e7   : > { %v1587_v14 = vsel %vm1583_vm13, %v1554_v6, %v1307_v15  ;;  %v1453_v33 = vsel %vm1451_vm9, %v2776_v19, %v1165_v0 }
 0x1e8   : > { %v1629_v61 = vsel %vm1623_vm14, %v1587_v14, 0 }
 0x1e9   : > { %1665 = vmatpush.bf16.xpose.msra.mxu0 %v1629_v61 }
 0x1ed   : > { %v1323_v1 = vpop.permute.xlu0 %1322 }
 0x1ee   : > { %v1603_v29 = vsel %vm1583_vm13, %v1570_v38, %v1323_v1  ;;  %v1216_v57 = vpop.permute.xlu1 %1215 }
 0x1ef   : > { %v1645_v49 = vsel %vm1623_vm14, %v1603_v29, 0  ;;  %v1502_v8 = vsel %vm1484_vm10, %v1469_v27, %v1216_v57 }
 0x1f0   : > { %1678 = vmatpush.bf16.xpose.msra.mxu1 %v1645_v49 }
 0x1f5   : > { %v1200_v52 = vpop.permute.xlu0 %1199 }
 0x1f6   : > { %v1270_v56 = vpop.permute.xlu1 %1269  ;;  %v1486_v51 = vsel %vm1484_vm10, %v1453_v33, %v1200_v52 }
 0x1f7   : > { %v1519_v44 = vsel %vm1517_vm12, %v1486_v51, %v1235_v28 }
 0x1f8   : > { %v1552_v53 = vsel %vm1550_vm11, %v1519_v44, %v1270_v56 }
 0x1fd   : > { %v1251_v55 = vpop.permute.xlu0 %1250 }
 0x1fe   : > { %v1535_v5 = vsel %vm1517_vm12, %v1502_v8, %v1251_v55  ;;  %v1321_v41 = vpop.permute.xlu1 %1320 }
 0x1ff   : > { %v1568_v9 = vsel %vm1550_vm11, %v1535_v5, %v1286_v26 }
 0x200   : > { %v1601_v34 = vsel %vm1583_vm13, %v1568_v9, %v1321_v41 }
 0x201   : > { %v1643_v7 = vsel %vm1623_vm14, %v1601_v34, 0 }
 0x202   : > { %1679 = vmatpush.bf16.xpose.msra.mxu1 %v1643_v7 }
 0x205   : > { %v1305_v20 = vpop.permute.xlu0 %1304 }
 0x206   : > { %v1585_v11 = vsel %vm1583_vm13, %v1552_v53, %v1305_v20 }
 0x207   : > { %v1627_v19 = vsel %vm1623_vm14, %v1585_v11, 0 }
 0x208   : > { %1666 = vmatpush.bf16.xpose.msra.mxu0 %v1627_v19 }
 0x209   : > { %1928 = vmatmul.msk.bf16.vlgmr.msra.gmra.mxu1 %vm1623_vm14, %v1616_v39 }
 0x20f   : > { %1927 = vmatmul.msk.bf16.vlgmr.msra.gmra.mxu0 %vm1623_vm14, %v1616_v39 }
 0x22a   : > { %v1621_v16 = vpop.permute.xlu2 %1620 }
 0x286   : > { %v1681_v31 = vpop.f32.mrf.mxu1 }
 0x287   : > { %v1682_v23 = vadd.f32 %v1681_v31, %v1621_v16 }
 0x289   : > { %v1703_v50 = vmul.f32 %v1682_v23, %v1682_v23  ;;  %v1696_v36 = vsel %vm1694_vm15, %v1682_v23, 0.0 }
 0x28b   : > { %v1705_v60 = vsel %vm1694_vm15, %v1703_v50, 0.0 }
 0x28c   : > { %v1668_v30 = vpop.f32.mrf.mxu0 }
 0x28d   : > { %v1669_v4 = vadd.f32 %v1668_v30, %v1621_v16 }
 0x28e   : > { %v1683_v59 = vpop.f32.mrf.mxu1 }
 0x28f   : > { %v1685_v42 = vpack.c.bf16 %v1682_v23, %v1669_v4  ;;  %v1695_v40 = vsel %vm1694_vm15, %v1669_v4, 0.0  ;;  %v1702_v47 = vmul.f32 %v1669_v4, %v1669_v4 }
 0x290   : > { %v1697_v62 = vadd.f32 %v1696_v36, %v1695_v40 }
 0x291   : > { %v1687_v10 = vrot.slane %v1685_v42, 2  ;;  %v1704_v21 = vsel %vm1694_vm15, %v1702_v47, 0.0 }
 0x292   : > { %1698 = vadd.xlane.f32.xlu0 %v1697_v62  ;;  %v1706_v63 = vadd.f32 %v1705_v60, %v1704_v21 }
 0x293   : > { %v1691_v12 = vsel %vm1688_vm0, %v1685_v42, %v1687_v10 }
 0x294   : > { %v1670_v24 = vpop.f32.mrf.mxu0  ;;  %1707 = vadd.xlane.f32.xlu1 %v1706_v63  ;;  %1693 = vst [vmem:[%s237_s14] sm:$0xf] %v1691_v12 }
 0x305   : > { %v1699_v13 = vpop.xlane.xlu0 %1698 }
 0x306   : > { %1701 = vst.msk [vmem:[%s241_s17] sm:$0xf] %vm1700_vm1, %v1699_v13 }
 0x307   : > { %v1708_v32 = vpop.xlane.xlu1 %1707 }
 0x308   : > { %1709 = vst.msk [vmem:[%s245_s21] sm:$0xf] %vm1700_vm1, %v1708_v32 }
 0x309 PF: > { %s16_s18 = sadd.s32 1, %s1976_s18  }
 0x30a   : > { %p13_p4 = scmp.ge.s32.totalorder %s16_s18, 4  }
 0x30c   :  { %15 = sbr.rel (!%p13_p4) target bundleno = 1 (0x1), region = 86 }

</bundles_post_ra>
